<compile_context>
chip_gen: v6e
topology: v6e:2x2x1
jax: 0.10.0
libtpu: 0.0.40
codegen_flags: <defaults>
</compile_context>

<pallas_src>
import functools

import jax
import jax.numpy as jnp
from jax.experimental import pallas as pl
from jax.experimental.pallas import tpu as pltpu

NEG_SLOPE = 0.1

_LANE = 128
_SUBLANE = 8
_VMEM_LIMIT = 32 * 1024 * 1024  # explicit scoped-VMEM budget, safe on v5e/v6e/v7x
_FC_WHOLE_K_LIMIT = 32768       # whole-K w1 block while Kp*Hp*2B*2buf <~ 16 MB


def _round_up(x, m):
    return (x + m - 1) // m * m


# ----------------------------------------------------------------------------
# Kernel 1: grouped, tiled  out[g] = act(x[g] @ w[g] + b[g])
#   bf16 operands on the MXU, f32 accumulator scratch, f32 epilogue, bf16 store.
# ----------------------------------------------------------------------------
def _gmm_kernel(x_ref, w_ref, b_ref, o_ref, acc_ref, *, apply_lrelu):
    k = pl.program_id(3)

    @pl.when(k == 0)
    def _():
        acc_ref[...] = jnp.zeros_like(acc_ref)

    acc_ref[...] += jnp.dot(x_ref[0], w_ref[0],
                            preferred_element_type=jnp.float32)

    @pl.when(k == pl.num_programs(3) - 1)
    def _():
        acc = acc_ref[...] + b_ref[0]          # (tm, tn) + (1, tn), f32
        if apply_lrelu:
            acc = jnp.where(acc > 0, acc, acc * NEG_SLOPE)
        o_ref[0] = acc.astype(o_ref.dtype)     # bf16 activation writeback


def grouped_matmul_bias_act(x, w, b, apply_lrelu):
    """x: (G, M, K) bf16, w: (G, K, N) bf16, b: (G, N) f32 -> (G, M, N) bf16."""
    G, M, K = x.shape
    Gw, Kw, N = w.shape
    assert G == Gw and K == Kw, (x.shape, w.shape)

    # Tile sizes: lane-dense N; tn=256 when it helps the 2x256 MXU (v6e/v7x);
    # tm up to 512 to amortize per-grid-step overhead; K streamed when large.
    tm = min(512, _round_up(M, _SUBLANE))
    tk = 512 if K > 1024 else _round_up(K, _LANE)
    tn = 256 if _round_up(N, _LANE) >= 256 else _LANE
    Mp, Kp, Np = _round_up(M, tm), _round_up(K, tk), _round_up(N, tn)

    xp = jnp.pad(x, ((0, 0), (0, Mp - M), (0, Kp - K))).astype(jnp.bfloat16)
    wp = jnp.pad(w, ((0, 0), (0, Kp - K), (0, Np - N))).astype(jnp.bfloat16)
    bp = jnp.pad(b, ((0, 0), (0, Np - N))).astype(jnp.float32).reshape(G, 1, Np)

    grid = (G, Mp // tm, Np // tn, Kp // tk)
    kernel = functools.partial(_gmm_kernel, apply_lrelu=apply_lrelu)
    out = pl.pallas_call(
        kernel,
        out_shape=jax.ShapeDtypeStruct((G, Mp, Np), jnp.bfloat16),
        grid=grid,
        in_specs=[
            pl.BlockSpec((1, tm, tk), lambda g, i, j, k: (g, i, k)),
            pl.BlockSpec((1, tk, tn), lambda g, i, j, k: (g, k, j)),
            pl.BlockSpec((1, 1, tn), lambda g, i, j, k: (g, 0, j)),
        ],
        out_specs=pl.BlockSpec((1, tm, tn), lambda g, i, j, k: (g, i, j)),
        scratch_shapes=[pltpu.VMEM((tm, tn), jnp.float32)],
        compiler_params=pltpu.CompilerParams(
            dimension_semantics=("parallel", "parallel", "parallel", "arbitrary"),
            vmem_limit_bytes=_VMEM_LIMIT,
        ),
    )(xp, wp, bp)
    # Padded rows/cols only ever saw bias+LeakyReLU of zeros; slice them off.
    return out[:, :M, :N]


# ----------------------------------------------------------------------------
# Kernel 2: grouped fused FC heads
#   out[g] = (leaky(x[g] @ w1[g] + b1[g])) @ w2[g] + b2[g]
# Group axis g (tnet / onet) is "parallel" -> one head per TensorCore on v7x.
# w1's K is loaded as a single whole block when it fits, else streamed in 4096
# chunks; FC2 runs in the epilogue (no HBM round trip for h1, single launch).
# ----------------------------------------------------------------------------
def _fc_head_kernel(x_ref, w1_ref, b1_ref, w2_ref, b2_ref, o_ref, acc_ref):
    k = pl.program_id(1)

    @pl.when(k == 0)
    def _():
        acc_ref[...] = jnp.zeros_like(acc_ref)

    acc_ref[...] += jnp.dot(x_ref[0], w1_ref[0],
                            preferred_element_type=jnp.float32)

    @pl.when(k == pl.num_programs(1) - 1)
    def _():
        h1 = acc_ref[...] + b1_ref[0]
        h1 = jnp.where(h1 > 0, h1, h1 * NEG_SLOPE)
        out = jnp.dot(h1.astype(jnp.bfloat16), w2_ref[0],
                      preferred_element_type=jnp.float32) + b2_ref[0]
        o_ref[0] = out.astype(o_ref.dtype)


def _fc_k_tiling(kmax):
    """Shared between weight pre-packing and the fc_head wrapper."""
    kp = _round_up(kmax, _LANE)
    if kp <= _FC_WHOLE_K_LIMIT:
        return kp, kp           # whole-K single block
    kp = _round_up(kmax, 4096)
    return kp, 4096


def fc_heads_grouped(x_g, w1_g, b1_g, w2_g, b2_g):
    """x_g: (G, M, Kp) bf16 (pre-padded K); weights pre-packed/padded bf16/f32.
    Returns (G, M, O_true is sliced by caller) f32 of shape (G, Mp, Op)."""
    G, M, Kp = x_g.shape
    _, Kw, Hp = w1_g.shape
    _, _, Op = w2_g.shape
    assert Kp == Kw, (x_g.shape, w1_g.shape)

    Mp = _round_up(M, _SUBLANE)
    _, tk = _fc_k_tiling(Kp)
    assert Kp % tk == 0

    xp = jnp.pad(x_g, ((0, 0), (0, Mp - M), (0, 0))).astype(jnp.bfloat16)

    out = pl.pallas_call(
        _fc_head_kernel,
        out_shape=jax.ShapeDtypeStruct((G, Mp, Op), jnp.float32),
        grid=(G, Kp // tk),
        in_specs=[
            pl.BlockSpec((1, Mp, tk), lambda g, k: (g, 0, k)),
            pl.BlockSpec((1, tk, Hp), lambda g, k: (g, k, 0)),
            pl.BlockSpec((1, 1, Hp), lambda g, k: (g, 0, 0)),
            pl.BlockSpec((1, Hp, Op), lambda g, k: (g, 0, 0)),
            pl.BlockSpec((1, 1, Op), lambda g, k: (g, 0, 0)),
        ],
        out_specs=pl.BlockSpec((1, Mp, Op), lambda g, k: (g, 0, 0)),
        scratch_shapes=[pltpu.VMEM((Mp, Hp), jnp.float32)],
        compiler_params=pltpu.CompilerParams(
            dimension_semantics=("parallel", "arbitrary"),
            vmem_limit_bytes=_VMEM_LIMIT,
        ),
    )(xp, w1_g, b1_g, w2_g, b2_g)
    return out  # (G, Mp, Op); caller slices [:, :M, :3]


# ----------------------------------------------------------------------------
# Conv2d lowering (PyTorch semantics) via im2col (bf16) + grouped Pallas matmul
# ----------------------------------------------------------------------------
def _im2col(x_nhwc, k, stride, pad):
    B, H, W, Cin = x_nhwc.shape
    xp = jnp.pad(x_nhwc, ((0, 0), (pad, pad), (pad, pad), (0, 0)))
    Hp, Wp = H + 2 * pad, W + 2 * pad
    Ho = (Hp - k) // stride + 1
    Wo = (Wp - k) // stride + 1
    patches = []
    for i in range(k):
        for j in range(k):
            patches.append(
                xp[:, i:i + (Ho - 1) * stride + 1:stride,
                      j:j + (Wo - 1) * stride + 1:stride, :])
    # layout: Cin fastest, then kw, then kh — matches _conv_w_mat below.
    cols = jnp.concatenate(patches, axis=-1).reshape(B * Ho * Wo, k * k * Cin)
    return cols, Ho, Wo


def _conv_w_mat(w_oihw):
    Cout, Cin, kh, kw = w_oihw.shape
    return jnp.transpose(w_oihw, (2, 3, 1, 0)).reshape(kh * kw * Cin, Cout)


# ----------------------------------------------------------------------------
# Parameter construction (deterministic)
# ----------------------------------------------------------------------------
def _init_conv(key, cout, cin, k):
    kw_, kb_ = jax.random.split(key)
    scale = 1.0 / jnp.sqrt(cin * k * k)
    w = jax.random.normal(kw_, (cout, cin, k, k), jnp.float32) * scale
    b = jax.random.normal(kb_, (cout,), jnp.float32) * 0.01
    return {"w": w, "b": b}


def _init_fc(key, fin, fout):
    kw_, kb_ = jax.random.split(key)
    scale = 1.0 / jnp.sqrt(fin)
    w = jax.random.normal(kw_, (fin, fout), jnp.float32) * scale
    b = jax.random.normal(kb_, (fout,), jnp.float32) * 0.01
    return {"w": w, "b": b}


# (cin, cout, k, stride, pad); ONET has one extra stride-2 conv vs TNET.
TNET_CONVS = [(2, 16, 3, 2, 1), (16, 32, 3, 2, 1), (32, 64, 3, 2, 1)]
ONET_CONVS = [(2, 16, 3, 2, 1), (16, 32, 3, 2, 1), (32, 64, 3, 2, 1), (64, 64, 3, 2, 1)]
FC_HIDDEN = 64
OUT_DIM = 3  # translation xyz / orientation euler angles


def _flat_size(convs, H, W):
    h, w = H, W
    for (_, cout, k, s, p) in convs:
        h = (h + 2 * p - k) // s + 1
        w = (w + 2 * p - k) // s + 1
    return h * w * convs[-1][1]


def init_params(key, H, W):
    params = {"tnet": {"convs": [], "fcs": []}, "onet": {"convs": [], "fcs": []}}
    keys = jax.random.split(key, 32)
    ki = 0
    for name, convs in (("tnet", TNET_CONVS), ("onet", ONET_CONVS)):
        for (cin, cout, k, _, _) in convs:
            params[name]["convs"].append(_init_conv(keys[ki], cout, cin, k))
            ki += 1
        fsz = _flat_size(convs, H, W)
        params[name]["fcs"].append(_init_fc(keys[ki], fsz, FC_HIDDEN)); ki += 1
        params[name]["fcs"].append(_init_fc(keys[ki], FC_HIDDEN, OUT_DIM)); ki += 1
    return params


def pack_params(params, H, W):
    """One-time weight packing: im2col weight matrices, group stacks, FC padding
    and bf16 casts done here so the per-forward critical path has no weight glue."""
    packed = {"shared_convs": [], "onet_extra": None}

    n_shared = len(TNET_CONVS)
    for li in range(n_shared):
        w_g = jnp.stack([_conv_w_mat(params["tnet"]["convs"][li]["w"]),
                         _conv_w_mat(params["onet"]["convs"][li]["w"])], axis=0)
        b_g = jnp.stack([params["tnet"]["convs"][li]["b"],
                         params["onet"]["convs"][li]["b"]], axis=0)
        packed["shared_convs"].append(
            {"w": w_g.astype(jnp.bfloat16), "b": b_g.astype(jnp.float32)})

    w_e = _conv_w_mat(params["onet"]["convs"][n_shared]["w"])[None]
    b_e = params["onet"]["convs"][n_shared]["b"][None]
    packed["onet_extra"] = {"w": w_e.astype(jnp.bfloat16),
                            "b": b_e.astype(jnp.float32)}

    # FC heads: pad both subnets' FC1 K dim to a common Kp so they run as one
    # grouped (G=2) call; zero-padded rows/cols contribute nothing.
    k_t = _flat_size(TNET_CONVS, H, W)
    k_o = _flat_size(ONET_CONVS, H, W)
    Kp, _ = _fc_k_tiling(max(k_t, k_o))
    Hp = _round_up(FC_HIDDEN, _LANE)
    Op = _round_up(OUT_DIM, _LANE)

    def pad_fc(fcs, k_true):
        w1 = jnp.pad(fcs[0]["w"], ((0, Kp - k_true), (0, Hp - FC_HIDDEN)))
        b1 = jnp.pad(fcs[0]["b"], (0, Hp - FC_HIDDEN)).reshape(1, Hp)
        w2 = jnp.pad(fcs[1]["w"], ((0, Hp - FC_HIDDEN), (0, Op - OUT_DIM)))
        b2 = jnp.pad(fcs[1]["b"], (0, Op - OUT_DIM)).reshape(1, Op)
        return w1, b1, w2, b2

    wt1, bt1, wt2, bt2 = pad_fc(params["tnet"]["fcs"], k_t)
    wo1, bo1, wo2, bo2 = pad_fc(params["onet"]["fcs"], k_o)
    packed["fc"] = {
        "w1": jnp.stack([wt1, wo1], 0).astype(jnp.bfloat16),
        "b1": jnp.stack([bt1, bo1], 0).astype(jnp.float32),
        "w2": jnp.stack([wt2, wo2], 0).astype(jnp.bfloat16),
        "b2": jnp.stack([bt2, bo2], 0).astype(jnp.float32),
    }
    return packed


# ----------------------------------------------------------------------------
# Full forward (takes pre-packed weights)
# ----------------------------------------------------------------------------
def deep_pco_forward(packed, x_nchw):
    # NCHW (PyTorch) -> NHWC, bf16 activations end-to-end (f32 accumulation in-kernel).
    x = jnp.transpose(x_nchw, (0, 2, 3, 1)).astype(jnp.bfloat16)
    B = x.shape[0]

    # Shared-shape conv stack: TNET + ONET layers run together in one grouped
    # pallas_call per layer (group axis = subnet).
    # TODO(synk): at real panoramic resolutions consider dropping the jnp.stack
    # grouping for the large early layers (extra write+read of the biggest tensor).
    h = {"tnet": x, "onet": x}
    n_shared = len(TNET_CONVS)
    for li in range(n_shared):
        cin, cout, k, s, p = TNET_CONVS[li]
        cols = {}
        Ho = Wo = None
        for name in ("tnet", "onet"):
            cols[name], Ho, Wo = _im2col(h[name], k, s, p)
        x_g = jnp.stack([cols["tnet"], cols["onet"]], axis=0)
        out = grouped_matmul_bias_act(
            x_g, packed["shared_convs"][li]["w"],
            packed["shared_convs"][li]["b"], apply_lrelu=True)
        h = {"tnet": out[0].reshape(B, Ho, Wo, cout),
             "onet": out[1].reshape(B, Ho, Wo, cout)}

    # ONET-only extra stride-2 conv.
    # TODO(synk): on v7x this G=1 call only megacore-splits if Mp//tm >= 2; at
    # real resolutions that holds, at tiny test shapes one core idles briefly.
    cin, cout, k, s, p = ONET_CONVS[n_shared]
    cols_o, Ho, Wo = _im2col(h["onet"], k, s, p)
    out = grouped_matmul_bias_act(
        cols_o[None], packed["onet_extra"]["w"], packed["onet_extra"]["b"],
        apply_lrelu=True)
    h["onet"] = out[0].reshape(B, Ho, Wo, cout)

    # Grouped fused FC heads (FC1 + LeakyReLU + FC2, both subnets in one launch).
    fc = packed["fc"]
    Kp = fc["w1"].shape[1]
    flat_t = h["tnet"].reshape(B, -1)
    flat_o = h["onet"].reshape(B, -1)
    flat_t = jnp.pad(flat_t, ((0, 0), (0, Kp - flat_t.shape[1])))
    flat_o = jnp.pad(flat_o, ((0, 0), (0, Kp - flat_o.shape[1])))
    x_g = jnp.stack([flat_t, flat_o], axis=0)  # (2, B, Kp) bf16

    heads = fc_heads_grouped(x_g, fc["w1"], fc["b1"], fc["w2"], fc["b2"])

    translation = heads[0, :B, :OUT_DIM]   # (B, 3) f32
    orientation = heads[1, :B, :OUT_DIM]   # (B, 3) f32
    pose = jnp.concatenate([translation, orientation], axis=1)  # (B, 6)
    return pose


# ----------------------------------------------------------------------------
if __name__ == "__main__":
    key = jax.random.PRNGKey(0)
    k_param, k_x = jax.random.split(key)

    B, C, H, W = 2, 2, 16, 32  # small synthetic panoramic depth-image pair
    x = jax.random.normal(k_x, (B, C, H, W), jnp.float32)

    params = init_params(k_param, H, W)
    packed = pack_params(params, H, W)   # one-time weight packing (off critical path)

    fwd = jax.jit(deep_pco_forward)
    pose = fwd(packed, x)
    pose = jax.block_until_ready(pose)

    assert pose.shape == (B, 6), pose.shape
    assert pose.dtype == jnp.float32
    assert bool(jnp.all(jnp.isfinite(pose)))
    print("KERNEL_OK")
</pallas_src>

<mosaic_0001>
module attributes {stable_mosaic.version = 11 : i64} {
  func.func @_gmm_kernel(%arg0: i32, %arg1: i32, %arg2: i32, %arg3: i32, %arg4: memref<1x256x128xbf16, #tpu.memory_space<vmem>>, %arg5: memref<1x128x128xbf16, #tpu.memory_space<vmem>>, %arg6: memref<1x1x128xf32, #tpu.memory_space<vmem>>, %arg7: memref<1x256x128xbf16, #tpu.memory_space<vmem>>, %arg8: memref<256x128xf32, #tpu.memory_space<vmem>>) attributes {dimension_semantics = [#tpu.dimension_semantics<parallel>, #tpu.dimension_semantics<parallel>, #tpu.dimension_semantics<parallel>, #tpu.dimension_semantics<arbitrary>], iteration_bounds = array<i64: 2, 1, 1, 1>, scalar_prefetch = 0 : i64, scratch_operands = 1 : i64, tpu.core_type = #tpu.core_type<tc>, window_params = [{transform_indices = @transform_0, window_bounds = array<i64: 1, 256, 128>}, {transform_indices = @transform_1, window_bounds = array<i64: 1, 128, 128>}, {transform_indices = @transform_2, window_bounds = array<i64: 1, 1, 128>}, {transform_indices = @transform_3, window_bounds = array<i64: 1, 256, 128>}]} {
    %c0_i32 = arith.constant 0 : i32
    %0 = arith.cmpi eq, %arg3, %c0_i32 : i32
    %1 = arith.extui %0 : i1 to i32
    %c0_i32_0 = arith.constant 0 : i32
    %2 = arith.cmpi ne, %1, %c0_i32_0 : i32
    scf.if %2 {
      %cst_12 = arith.constant 0.000000e+00 : f32
      %14 = vector.broadcast %cst_12 : f32 to vector<256x128xf32>
      %c0_13 = arith.constant 0 : index
      %c0_14 = arith.constant 0 : index
      %15 = vector.load %arg8[%c0_13, %c0_14] : memref<256x128xf32, #tpu.memory_space<vmem>>, vector<256x128xf32>
      tpu.vector_store %arg8[%c0_13, %c0_14], %14 {strides = array<i32>} : memref<256x128xf32, #tpu.memory_space<vmem>>, vector<256x128xf32>,
    } else {
    }
    %c0 = arith.constant 0 : index
    %c0_1 = arith.constant 0 : index
    %3 = vector.load %arg8[%c0, %c0_1] : memref<256x128xf32, #tpu.memory_space<vmem>>, vector<256x128xf32>
    %c0_2 = arith.constant 0 : index
    %c0_3 = arith.constant 0 : index
    %c0_4 = arith.constant 0 : index
    %4 = vector.load %arg4[%c0_2, %c0_3, %c0_4] : memref<1x256x128xbf16, #tpu.memory_space<vmem>>, vector<1x256x128xbf16>
    %5 = vector.shape_cast %4 : vector<1x256x128xbf16> to vector<256x128xbf16>
    %c0_5 = arith.constant 0 : index
    %c0_6 = arith.constant 0 : index
    %c0_7 = arith.constant 0 : index
    %6 = vector.load %arg5[%c0_5, %c0_6, %c0_7] : memref<1x128x128xbf16, #tpu.memory_space<vmem>>, vector<1x128x128xbf16>
    %7 = vector.shape_cast %6 : vector<1x128x128xbf16> to vector<128x128xbf16>
    %cst = arith.constant dense<0.000000e+00> : vector<256x128xf32>
    %8 = tpu.matmul %5, %7, %cst {dimension_numbers = #tpu.dot_dimension_numbers<[1], [0], [0], [1], [0, 0, 1, 1], [], []>} : vector<256x128xbf16>, vector<128x128xbf16>, vector<256x128xf32> -> vector<256x128xf32>
    %9 = arith.addf %3, %8 : vector<256x128xf32>
    %c0_8 = arith.constant 0 : index
    %c0_9 = arith.constant 0 : index
    %10 = vector.load %arg8[%c0_8, %c0_9] : memref<256x128xf32, #tpu.memory_space<vmem>>, vector<256x128xf32>
    tpu.vector_store %arg8[%c0_8, %c0_9], %9 {strides = array<i32>} : memref<256x128xf32, #tpu.memory_space<vmem>>, vector<256x128xf32>,
    %c0_i32_10 = arith.constant 0 : i32
    %11 = arith.cmpi eq, %arg3, %c0_i32_10 : i32
    %12 = arith.extui %11 : i1 to i32
    %c0_i32_11 = arith.constant 0 : i32
    %13 = arith.cmpi ne, %12, %c0_i32_11 : i32
    scf.if %13 {
      %c0_12 = arith.constant 0 : index
      %c0_13 = arith.constant 0 : index
      %14 = vector.load %arg8[%c0_12, %c0_13] : memref<256x128xf32, #tpu.memory_space<vmem>>, vector<256x128xf32>
      %c0_14 = arith.constant 0 : index
      %c0_15 = arith.constant 0 : index
      %c0_16 = arith.constant 0 : index
      %15 = vector.load %arg6[%c0_14, %c0_15, %c0_16] : memref<1x1x128xf32, #tpu.memory_space<vmem>>, vector<1x1x128xf32>
      %16 = vector.shape_cast %15 : vector<1x1x128xf32> to vector<1x128xf32>
      %17 = vector.broadcast %16 : vector<1x128xf32> to vector<256x128xf32>
      %18 = arith.addf %14, %17 : vector<256x128xf32>
      %cst_17 = arith.constant 0.000000e+00 : f32
      %19 = vector.broadcast %cst_17 : f32 to vector<256x128xf32>
      %20 = arith.cmpf ogt, %18, %19 : vector<256x128xf32>
      %cst_18 = arith.constant 1.000000e-01 : f32
      %21 = vector.broadcast %cst_18 : f32 to vector<256x128xf32>
      %22 = arith.mulf %18, %21 : vector<256x128xf32>
      %23 = arith.select %20, %18, %22 : vector<256x128xi1>, vector<256x128xf32>
      %24 = arith.truncf %23 : vector<256x128xf32> to vector<256x128xbf16>
      %c0_19 = arith.constant 0 : index
      %c0_20 = arith.constant 0 : index
      %c0_21 = arith.constant 0 : index
      %25 = vector.load %arg7[%c0_19, %c0_20, %c0_21] : memref<1x256x128xbf16, #tpu.memory_space<vmem>>, vector<1x256x128xbf16>
      %26 = vector.shape_cast %25 : vector<1x256x128xbf16> to vector<256x128xbf16>
      %27 = vector.shape_cast %24 : vector<256x128xbf16> to vector<1x256x128xbf16>
      tpu.vector_store %arg7[%c0_19, %c0_20, %c0_21], %27 {strides = array<i32>} : memref<1x256x128xbf16, #tpu.memory_space<vmem>>, vector<1x256x128xbf16>,
    } else {
    }
    return
  }
  func.func @transform_0(%arg0: i32, %arg1: i32, %arg2: i32, %arg3: i32) -> (i32, i32, i32) {
    %c0_i32 = arith.constant 0 : i32
    return %arg0, %arg1, %arg3 : i32, i32, i32
  }
  func.func @transform_1(%arg0: i32, %arg1: i32, %arg2: i32, %arg3: i32) -> (i32, i32, i32) {
    %c0_i32 = arith.constant 0 : i32
    return %arg0, %arg3, %arg2 : i32, i32, i32
  }
  func.func @transform_2(%arg0: i32, %arg1: i32, %arg2: i32, %arg3: i32) -> (i32, i32, i32) {
    %c0_i32 = arith.constant 0 : i32
    %c0_i32_0 = arith.constant 0 : i32
    return %arg0, %c0_i32, %arg2 : i32, i32, i32
  }
  func.func @transform_3(%arg0: i32, %arg1: i32, %arg2: i32, %arg3: i32) -> (i32, i32, i32) {
    %c0_i32 = arith.constant 0 : i32
    return %arg0, %arg1, %arg2 : i32, i32, i32
  }
}

module attributes {stable_mosaic.version = 11 : i64} {
  func.func @_gmm_kernel(%arg0: i32, %arg1: i32, %arg2: i32, %arg3: i32, %arg4: memref<1x64x256xbf16, #tpu.memory_space<vmem>>, %arg5: memref<1x256x128xbf16, #tpu.memory_space<vmem>>, %arg6: memref<1x1x128xf32, #tpu.memory_space<vmem>>, %arg7: memref<1x64x128xbf16, #tpu.memory_space<vmem>>, %arg8: memref<64x128xf32, #tpu.memory_space<vmem>>) attributes {dimension_semantics = [#tpu.dimension_semantics<parallel>, #tpu.dimension_semantics<parallel>, #tpu.dimension_semantics<parallel>, #tpu.dimension_semantics<arbitrary>], iteration_bounds = array<i64: 2, 1, 1, 1>, scalar_prefetch = 0 : i64, scratch_operands = 1 : i64, tpu.core_type = #tpu.core_type<tc>, window_params = [{transform_indices = @transform_0, window_bounds = array<i64: 1, 64, 256>}, {transform_indices = @transform_1, window_bounds = array<i64: 1, 256, 128>}, {transform_indices = @transform_2, window_bounds = array<i64: 1, 1, 128>}, {transform_indices = @transform_3, window_bounds = array<i64: 1, 64, 128>}]} {
    %c0_i32 = arith.constant 0 : i32
    %0 = arith.cmpi eq, %arg3, %c0_i32 : i32
    %1 = arith.extui %0 : i1 to i32
    %c0_i32_0 = arith.constant 0 : i32
    %2 = arith.cmpi ne, %1, %c0_i32_0 : i32
    scf.if %2 {
      %cst_12 = arith.constant 0.000000e+00 : f32
      %14 = vector.broadcast %cst_12 : f32 to vector<64x128xf32>
      %c0_13 = arith.constant 0 : index
      %c0_14 = arith.constant 0 : index
      %15 = vector.load %arg8[%c0_13, %c0_14] : memref<64x128xf32, #tpu.memory_space<vmem>>, vector<64x128xf32>
      tpu.vector_store %arg8[%c0_13, %c0_14], %14 {strides = array<i32>} : memref<64x128xf32, #tpu.memory_space<vmem>>, vector<64x128xf32>,
    } else {
    }
    %c0 = arith.constant 0 : index
    %c0_1 = arith.constant 0 : index
    %3 = vector.load %arg8[%c0, %c0_1] : memref<64x128xf32, #tpu.memory_space<vmem>>, vector<64x128xf32>
    %c0_2 = arith.constant 0 : index
    %c0_3 = arith.constant 0 : index
    %c0_4 = arith.constant 0 : index
    %4 = vector.load %arg4[%c0_2, %c0_3, %c0_4] : memref<1x64x256xbf16, #tpu.memory_space<vmem>>, vector<1x64x256xbf16>
    %5 = vector.shape_cast %4 : vector<1x64x256xbf16> to vector<64x256xbf16>
    %c0_5 = arith.constant 0 : index
    %c0_6 = arith.constant 0 : index
    %c0_7 = arith.constant 0 : index
    %6 = vector.load %arg5[%c0_5, %c0_6, %c0_7] : memref<1x256x128xbf16, #tpu.memory_space<vmem>>, vector<1x256x128xbf16>
    %7 = vector.shape_cast %6 : vector<1x256x128xbf16> to vector<256x128xbf16>
    %cst = arith.constant dense<0.000000e+00> : vector<64x128xf32>
    %8 = tpu.matmul %5, %7, %cst {dimension_numbers = #tpu.dot_dimension_numbers<[1], [0], [0], [1], [0, 0, 1, 1], [], []>} : vector<64x256xbf16>, vector<256x128xbf16>, vector<64x128xf32> -> vector<64x128xf32>
    %9 = arith.addf %3, %8 : vector<64x128xf32>
    %c0_8 = arith.constant 0 : index
    %c0_9 = arith.constant 0 : index
    %10 = vector.load %arg8[%c0_8, %c0_9] : memref<64x128xf32, #tpu.memory_space<vmem>>, vector<64x128xf32>
    tpu.vector_store %arg8[%c0_8, %c0_9], %9 {strides = array<i32>} : memref<64x128xf32, #tpu.memory_space<vmem>>, vector<64x128xf32>,
    %c0_i32_10 = arith.constant 0 : i32
    %11 = arith.cmpi eq, %arg3, %c0_i32_10 : i32
    %12 = arith.extui %11 : i1 to i32
    %c0_i32_11 = arith.constant 0 : i32
    %13 = arith.cmpi ne, %12, %c0_i32_11 : i32
    scf.if %13 {
      %c0_12 = arith.constant 0 : index
      %c0_13 = arith.constant 0 : index
      %14 = vector.load %arg8[%c0_12, %c0_13] : memref<64x128xf32, #tpu.memory_space<vmem>>, vector<64x128xf32>
      %c0_14 = arith.constant 0 : index
      %c0_15 = arith.constant 0 : index
      %c0_16 = arith.constant 0 : index
      %15 = vector.load %arg6[%c0_14, %c0_15, %c0_16] : memref<1x1x128xf32, #tpu.memory_space<vmem>>, vector<1x1x128xf32>
      %16 = vector.shape_cast %15 : vector<1x1x128xf32> to vector<1x128xf32>
      %17 = vector.broadcast %16 : vector<1x128xf32> to vector<64x128xf32>
      %18 = arith.addf %14, %17 : vector<64x128xf32>
      %cst_17 = arith.constant 0.000000e+00 : f32
      %19 = vector.broadcast %cst_17 : f32 to vector<64x128xf32>
      %20 = arith.cmpf ogt, %18, %19 : vector<64x128xf32>
      %cst_18 = arith.constant 1.000000e-01 : f32
      %21 = vector.broadcast %cst_18 : f32 to vector<64x128xf32>
      %22 = arith.mulf %18, %21 : vector<64x128xf32>
      %23 = arith.select %20, %18, %22 : vector<64x128xi1>, vector<64x128xf32>
      %24 = arith.truncf %23 : vector<64x128xf32> to vector<64x128xbf16>
      %c0_19 = arith.constant 0 : index
      %c0_20 = arith.constant 0 : index
      %c0_21 = arith.constant 0 : index
      %25 = vector.load %arg7[%c0_19, %c0_20, %c0_21] : memref<1x64x128xbf16, #tpu.memory_space<vmem>>, vector<1x64x128xbf16>
      %26 = vector.shape_cast %25 : vector<1x64x128xbf16> to vector<64x128xbf16>
      %27 = vector.shape_cast %24 : vector<64x128xbf16> to vector<1x64x128xbf16>
      tpu.vector_store %arg7[%c0_19, %c0_20, %c0_21], %27 {strides = array<i32>} : memref<1x64x128xbf16, #tpu.memory_space<vmem>>, vector<1x64x128xbf16>,
    } else {
    }
    return
  }
  func.func @transform_0(%arg0: i32, %arg1: i32, %arg2: i32, %arg3: i32) -> (i32, i32, i32) {
    %c0_i32 = arith.constant 0 : i32
    return %arg0, %arg1, %arg3 : i32, i32, i32
  }
  func.func @transform_1(%arg0: i32, %arg1: i32, %arg2: i32, %arg3: i32) -> (i32, i32, i32) {
    %c0_i32 = arith.constant 0 : i32
    return %arg0, %arg3, %arg2 : i32, i32, i32
  }
  func.func @transform_2(%arg0: i32, %arg1: i32, %arg2: i32, %arg3: i32) -> (i32, i32, i32) {
    %c0_i32 = arith.constant 0 : i32
    %c0_i32_0 = arith.constant 0 : i32
    return %arg0, %c0_i32, %arg2 : i32, i32, i32
  }
  func.func @transform_3(%arg0: i32, %arg1: i32, %arg2: i32, %arg3: i32) -> (i32, i32, i32) {
    %c0_i32 = arith.constant 0 : i32
    return %arg0, %arg1, %arg2 : i32, i32, i32
  }
}

module attributes {stable_mosaic.version = 11 : i64} {
  func.func @_gmm_kernel(%arg0: i32, %arg1: i32, %arg2: i32, %arg3: i32, %arg4: memref<1x16x384xbf16, #tpu.memory_space<vmem>>, %arg5: memref<1x384x128xbf16, #tpu.memory_space<vmem>>, %arg6: memref<1x1x128xf32, #tpu.memory_space<vmem>>, %arg7: memref<1x16x128xbf16, #tpu.memory_space<vmem>>, %arg8: memref<16x128xf32, #tpu.memory_space<vmem>>) attributes {dimension_semantics = [#tpu.dimension_semantics<parallel>, #tpu.dimension_semantics<parallel>, #tpu.dimension_semantics<parallel>, #tpu.dimension_semantics<arbitrary>], iteration_bounds = array<i64: 2, 1, 1, 1>, scalar_prefetch = 0 : i64, scratch_operands = 1 : i64, tpu.core_type = #tpu.core_type<tc>, window_params = [{transform_indices = @transform_0, window_bounds = array<i64: 1, 16, 384>}, {transform_indices = @transform_1, window_bounds = array<i64: 1, 384, 128>}, {transform_indices = @transform_2, window_bounds = array<i64: 1, 1, 128>}, {transform_indices = @transform_3, window_bounds = array<i64: 1, 16, 128>}]} {
    %c0_i32 = arith.constant 0 : i32
    %0 = arith.cmpi eq, %arg3, %c0_i32 : i32
    %1 = arith.extui %0 : i1 to i32
    %c0_i32_0 = arith.constant 0 : i32
    %2 = arith.cmpi ne, %1, %c0_i32_0 : i32
    scf.if %2 {
      %cst_12 = arith.constant 0.000000e+00 : f32
      %14 = vector.broadcast %cst_12 : f32 to vector<16x128xf32>
      %c0_13 = arith.constant 0 : index
      %c0_14 = arith.constant 0 : index
      %15 = vector.load %arg8[%c0_13, %c0_14] : memref<16x128xf32, #tpu.memory_space<vmem>>, vector<16x128xf32>
      tpu.vector_store %arg8[%c0_13, %c0_14], %14 {strides = array<i32>} : memref<16x128xf32, #tpu.memory_space<vmem>>, vector<16x128xf32>,
    } else {
    }
    %c0 = arith.constant 0 : index
    %c0_1 = arith.constant 0 : index
    %3 = vector.load %arg8[%c0, %c0_1] : memref<16x128xf32, #tpu.memory_space<vmem>>, vector<16x128xf32>
    %c0_2 = arith.constant 0 : index
    %c0_3 = arith.constant 0 : index
    %c0_4 = arith.constant 0 : index
    %4 = vector.load %arg4[%c0_2, %c0_3, %c0_4] : memref<1x16x384xbf16, #tpu.memory_space<vmem>>, vector<1x16x384xbf16>
    %5 = vector.shape_cast %4 : vector<1x16x384xbf16> to vector<16x384xbf16>
    %c0_5 = arith.constant 0 : index
    %c0_6 = arith.constant 0 : index
    %c0_7 = arith.constant 0 : index
    %6 = vector.load %arg5[%c0_5, %c0_6, %c0_7] : memref<1x384x128xbf16, #tpu.memory_space<vmem>>, vector<1x384x128xbf16>
    %7 = vector.shape_cast %6 : vector<1x384x128xbf16> to vector<384x128xbf16>
    %cst = arith.constant dense<0.000000e+00> : vector<16x128xf32>
    %8 = tpu.matmul %5, %7, %cst {dimension_numbers = #tpu.dot_dimension_numbers<[1], [0], [0], [1], [0, 0, 1, 1], [], []>} : vector<16x384xbf16>, vector<384x128xbf16>, vector<16x128xf32> -> vector<16x128xf32>
    %9 = arith.addf %3, %8 : vector<16x128xf32>
    %c0_8 = arith.constant 0 : index
    %c0_9 = arith.constant 0 : index
    %10 = vector.load %arg8[%c0_8, %c0_9] : memref<16x128xf32, #tpu.memory_space<vmem>>, vector<16x128xf32>
    tpu.vector_store %arg8[%c0_8, %c0_9], %9 {strides = array<i32>} : memref<16x128xf32, #tpu.memory_space<vmem>>, vector<16x128xf32>,
    %c0_i32_10 = arith.constant 0 : i32
    %11 = arith.cmpi eq, %arg3, %c0_i32_10 : i32
    %12 = arith.extui %11 : i1 to i32
    %c0_i32_11 = arith.constant 0 : i32
    %13 = arith.cmpi ne, %12, %c0_i32_11 : i32
    scf.if %13 {
      %c0_12 = arith.constant 0 : index
      %c0_13 = arith.constant 0 : index
      %14 = vector.load %arg8[%c0_12, %c0_13] : memref<16x128xf32, #tpu.memory_space<vmem>>, vector<16x128xf32>
      %c0_14 = arith.constant 0 : index
      %c0_15 = arith.constant 0 : index
      %c0_16 = arith.constant 0 : index
      %15 = vector.load %arg6[%c0_14, %c0_15, %c0_16] : memref<1x1x128xf32, #tpu.memory_space<vmem>>, vector<1x1x128xf32>
      %16 = vector.shape_cast %15 : vector<1x1x128xf32> to vector<1x128xf32>
      %17 = vector.broadcast %16 : vector<1x128xf32> to vector<16x128xf32>
      %18 = arith.addf %14, %17 : vector<16x128xf32>
      %cst_17 = arith.constant 0.000000e+00 : f32
      %19 = vector.broadcast %cst_17 : f32 to vector<16x128xf32>
      %20 = arith.cmpf ogt, %18, %19 : vector<16x128xf32>
      %cst_18 = arith.constant 1.000000e-01 : f32
      %21 = vector.broadcast %cst_18 : f32 to vector<16x128xf32>
      %22 = arith.mulf %18, %21 : vector<16x128xf32>
      %23 = arith.select %20, %18, %22 : vector<16x128xi1>, vector<16x128xf32>
      %24 = arith.truncf %23 : vector<16x128xf32> to vector<16x128xbf16>
      %c0_19 = arith.constant 0 : index
      %c0_20 = arith.constant 0 : index
      %c0_21 = arith.constant 0 : index
      %25 = vector.load %arg7[%c0_19, %c0_20, %c0_21] : memref<1x16x128xbf16, #tpu.memory_space<vmem>>, vector<1x16x128xbf16>
      %26 = vector.shape_cast %25 : vector<1x16x128xbf16> to vector<16x128xbf16>
      %27 = vector.shape_cast %24 : vector<16x128xbf16> to vector<1x16x128xbf16>
      tpu.vector_store %arg7[%c0_19, %c0_20, %c0_21], %27 {strides = array<i32>} : memref<1x16x128xbf16, #tpu.memory_space<vmem>>, vector<1x16x128xbf16>,
    } else {
    }
    return
  }
  func.func @transform_0(%arg0: i32, %arg1: i32, %arg2: i32, %arg3: i32) -> (i32, i32, i32) {
    %c0_i32 = arith.constant 0 : i32
    return %arg0, %arg1, %arg3 : i32, i32, i32
  }
  func.func @transform_1(%arg0: i32, %arg1: i32, %arg2: i32, %arg3: i32) -> (i32, i32, i32) {
    %c0_i32 = arith.constant 0 : i32
    return %arg0, %arg3, %arg2 : i32, i32, i32
  }
  func.func @transform_2(%arg0: i32, %arg1: i32, %arg2: i32, %arg3: i32) -> (i32, i32, i32) {
    %c0_i32 = arith.constant 0 : i32
    %c0_i32_0 = arith.constant 0 : i32
    return %arg0, %c0_i32, %arg2 : i32, i32, i32
  }
  func.func @transform_3(%arg0: i32, %arg1: i32, %arg2: i32, %arg3: i32) -> (i32, i32, i32) {
    %c0_i32 = arith.constant 0 : i32
    return %arg0, %arg1, %arg2 : i32, i32, i32
  }
}

module attributes {stable_mosaic.version = 11 : i64} {
  func.func @_gmm_kernel(%arg0: i32, %arg1: i32, %arg2: i32, %arg3: i32, %arg4: memref<1x8x640xbf16, #tpu.memory_space<vmem>>, %arg5: memref<1x640x128xbf16, #tpu.memory_space<vmem>>, %arg6: memref<1x1x128xf32, #tpu.memory_space<vmem>>, %arg7: memref<1x8x128xbf16, #tpu.memory_space<vmem>>, %arg8: memref<8x128xf32, #tpu.memory_space<vmem>>) attributes {dimension_semantics = [#tpu.dimension_semantics<parallel>, #tpu.dimension_semantics<parallel>, #tpu.dimension_semantics<parallel>, #tpu.dimension_semantics<arbitrary>], iteration_bounds = array<i64: 1, 1, 1, 1>, scalar_prefetch = 0 : i64, scratch_operands = 1 : i64, tpu.core_type = #tpu.core_type<tc>, window_params = [{transform_indices = @transform_0, window_bounds = array<i64: 1, 8, 640>}, {transform_indices = @transform_1, window_bounds = array<i64: 1, 640, 128>}, {transform_indices = @transform_2, window_bounds = array<i64: 1, 1, 128>}, {transform_indices = @transform_3, window_bounds = array<i64: 1, 8, 128>}]} {
    %c0_i32 = arith.constant 0 : i32
    %0 = arith.cmpi eq, %arg3, %c0_i32 : i32
    %1 = arith.extui %0 : i1 to i32
    %c0_i32_0 = arith.constant 0 : i32
    %2 = arith.cmpi ne, %1, %c0_i32_0 : i32
    scf.if %2 {
      %cst_12 = arith.constant 0.000000e+00 : f32
      %14 = vector.broadcast %cst_12 : f32 to vector<8x128xf32>
      %c0_13 = arith.constant 0 : index
      %c0_14 = arith.constant 0 : index
      %15 = vector.load %arg8[%c0_13, %c0_14] : memref<8x128xf32, #tpu.memory_space<vmem>>, vector<8x128xf32>
      tpu.vector_store %arg8[%c0_13, %c0_14], %14 {strides = array<i32>} : memref<8x128xf32, #tpu.memory_space<vmem>>, vector<8x128xf32>,
    } else {
    }
    %c0 = arith.constant 0 : index
    %c0_1 = arith.constant 0 : index
    %3 = vector.load %arg8[%c0, %c0_1] : memref<8x128xf32, #tpu.memory_space<vmem>>, vector<8x128xf32>
    %c0_2 = arith.constant 0 : index
    %c0_3 = arith.constant 0 : index
    %c0_4 = arith.constant 0 : index
    %4 = vector.load %arg4[%c0_2, %c0_3, %c0_4] : memref<1x8x640xbf16, #tpu.memory_space<vmem>>, vector<1x8x640xbf16>
    %5 = vector.shape_cast %4 : vector<1x8x640xbf16> to vector<8x640xbf16>
    %c0_5 = arith.constant 0 : index
    %c0_6 = arith.constant 0 : index
    %c0_7 = arith.constant 0 : index
    %6 = vector.load %arg5[%c0_5, %c0_6, %c0_7] : memref<1x640x128xbf16, #tpu.memory_space<vmem>>, vector<1x640x128xbf16>
    %7 = vector.shape_cast %6 : vector<1x640x128xbf16> to vector<640x128xbf16>
    %cst = arith.constant dense<0.000000e+00> : vector<8x128xf32>
    %8 = tpu.matmul %5, %7, %cst {dimension_numbers = #tpu.dot_dimension_numbers<[1], [0], [0], [1], [0, 0, 1, 1], [], []>} : vector<8x640xbf16>, vector<640x128xbf16>, vector<8x128xf32> -> vector<8x128xf32>
    %9 = arith.addf %3, %8 : vector<8x128xf32>
    %c0_8 = arith.constant 0 : index
    %c0_9 = arith.constant 0 : index
    %10 = vector.load %arg8[%c0_8, %c0_9] : memref<8x128xf32, #tpu.memory_space<vmem>>, vector<8x128xf32>
    tpu.vector_store %arg8[%c0_8, %c0_9], %9 {strides = array<i32>} : memref<8x128xf32, #tpu.memory_space<vmem>>, vector<8x128xf32>,
    %c0_i32_10 = arith.constant 0 : i32
    %11 = arith.cmpi eq, %arg3, %c0_i32_10 : i32
    %12 = arith.extui %11 : i1 to i32
    %c0_i32_11 = arith.constant 0 : i32
    %13 = arith.cmpi ne, %12, %c0_i32_11 : i32
    scf.if %13 {
      %c0_12 = arith.constant 0 : index
      %c0_13 = arith.constant 0 : index
      %14 = vector.load %arg8[%c0_12, %c0_13] : memref<8x128xf32, #tpu.memory_space<vmem>>, vector<8x128xf32>
      %c0_14 = arith.constant 0 : index
      %c0_15 = arith.constant 0 : index
      %c0_16 = arith.constant 0 : index
      %15 = vector.load %arg6[%c0_14, %c0_15, %c0_16] : memref<1x1x128xf32, #tpu.memory_space<vmem>>, vector<1x1x128xf32>
      %16 = vector.shape_cast %15 : vector<1x1x128xf32> to vector<1x128xf32>
      %17 = vector.broadcast %16 : vector<1x128xf32> to vector<8x128xf32>
      %18 = arith.addf %14, %17 : vector<8x128xf32>
      %cst_17 = arith.constant 0.000000e+00 : f32
      %19 = vector.broadcast %cst_17 : f32 to vector<8x128xf32>
      %20 = arith.cmpf ogt, %18, %19 : vector<8x128xf32>
      %cst_18 = arith.constant 1.000000e-01 : f32
      %21 = vector.broadcast %cst_18 : f32 to vector<8x128xf32>
      %22 = arith.mulf %18, %21 : vector<8x128xf32>
      %23 = arith.select %20, %18, %22 : vector<8x128xi1>, vector<8x128xf32>
      %24 = arith.truncf %23 : vector<8x128xf32> to vector<8x128xbf16>
      %c0_19 = arith.constant 0 : index
      %c0_20 = arith.constant 0 : index
      %c0_21 = arith.constant 0 : index
      %25 = vector.load %arg7[%c0_19, %c0_20, %c0_21] : memref<1x8x128xbf16, #tpu.memory_space<vmem>>, vector<1x8x128xbf16>
      %26 = vector.shape_cast %25 : vector<1x8x128xbf16> to vector<8x128xbf16>
      %27 = vector.shape_cast %24 : vector<8x128xbf16> to vector<1x8x128xbf16>
      tpu.vector_store %arg7[%c0_19, %c0_20, %c0_21], %27 {strides = array<i32>} : memref<1x8x128xbf16, #tpu.memory_space<vmem>>, vector<1x8x128xbf16>,
    } else {
    }
    return
  }
  func.func @transform_0(%arg0: i32, %arg1: i32, %arg2: i32, %arg3: i32) -> (i32, i32, i32) {
    %c0_i32 = arith.constant 0 : i32
    return %arg0, %arg1, %arg3 : i32, i32, i32
  }
  func.func @transform_1(%arg0: i32, %arg1: i32, %arg2: i32, %arg3: i32) -> (i32, i32, i32) {
    %c0_i32 = arith.constant 0 : i32
    return %arg0, %arg3, %arg2 : i32, i32, i32
  }
  func.func @transform_2(%arg0: i32, %arg1: i32, %arg2: i32, %arg3: i32) -> (i32, i32, i32) {
    %c0_i32 = arith.constant 0 : i32
    %c0_i32_0 = arith.constant 0 : i32
    return %arg0, %c0_i32, %arg2 : i32, i32, i32
  }
  func.func @transform_3(%arg0: i32, %arg1: i32, %arg2: i32, %arg3: i32) -> (i32, i32, i32) {
    %c0_i32 = arith.constant 0 : i32
    return %arg0, %arg1, %arg2 : i32, i32, i32
  }
}

module attributes {stable_mosaic.version = 11 : i64} {
  func.func @_fc_head_kernel(%arg0: i32, %arg1: i32, %arg2: memref<1x8x512xbf16, #tpu.memory_space<vmem>>, %arg3: memref<1x512x128xbf16, #tpu.memory_space<vmem>>, %arg4: memref<1x1x128xf32, #tpu.memory_space<vmem>>, %arg5: memref<1x128x128xbf16, #tpu.memory_space<vmem>>, %arg6: memref<1x1x128xf32, #tpu.memory_space<vmem>>, %arg7: memref<1x8x128xf32, #tpu.memory_space<vmem>>, %arg8: memref<8x128xf32, #tpu.memory_space<vmem>>) attributes {dimension_semantics = [#tpu.dimension_semantics<parallel>, #tpu.dimension_semantics<arbitrary>], iteration_bounds = array<i64: 2, 1>, scalar_prefetch = 0 : i64, scratch_operands = 1 : i64, tpu.core_type = #tpu.core_type<tc>, window_params = [{transform_indices = @transform_0, window_bounds = array<i64: 1, 8, 512>}, {transform_indices = @transform_1, window_bounds = array<i64: 1, 512, 128>}, {transform_indices = @transform_2, window_bounds = array<i64: 1, 1, 128>}, {transform_indices = @transform_3, window_bounds = array<i64: 1, 128, 128>}, {transform_indices = @transform_4, window_bounds = array<i64: 1, 1, 128>}, {transform_indices = @transform_5, window_bounds = array<i64: 1, 8, 128>}]} {
    %c0_i32 = arith.constant 0 : i32
    %0 = arith.cmpi eq, %arg1, %c0_i32 : i32
    %1 = arith.extui %0 : i1 to i32
    %c0_i32_0 = arith.constant 0 : i32
    %2 = arith.cmpi ne, %1, %c0_i32_0 : i32
    scf.if %2 {
      %cst_12 = arith.constant 0.000000e+00 : f32
      %14 = vector.broadcast %cst_12 : f32 to vector<8x128xf32>
      %c0_13 = arith.constant 0 : index
      %c0_14 = arith.constant 0 : index
      %15 = vector.load %arg8[%c0_13, %c0_14] : memref<8x128xf32, #tpu.memory_space<vmem>>, vector<8x128xf32>
      tpu.vector_store %arg8[%c0_13, %c0_14], %14 {strides = array<i32>} : memref<8x128xf32, #tpu.memory_space<vmem>>, vector<8x128xf32>,
    } else {
    }
    %c0 = arith.constant 0 : index
    %c0_1 = arith.constant 0 : index
    %3 = vector.load %arg8[%c0, %c0_1] : memref<8x128xf32, #tpu.memory_space<vmem>>, vector<8x128xf32>
    %c0_2 = arith.constant 0 : index
    %c0_3 = arith.constant 0 : index
    %c0_4 = arith.constant 0 : index
    %4 = vector.load %arg2[%c0_2, %c0_3, %c0_4] : memref<1x8x512xbf16, #tpu.memory_space<vmem>>, vector<1x8x512xbf16>
    %5 = vector.shape_cast %4 : vector<1x8x512xbf16> to vector<8x512xbf16>
    %c0_5 = arith.constant 0 : index
    %c0_6 = arith.constant 0 : index
    %c0_7 = arith.constant 0 : index
    %6 = vector.load %arg3[%c0_5, %c0_6, %c0_7] : memref<1x512x128xbf16, #tpu.memory_space<vmem>>, vector<1x512x128xbf16>
    %7 = vector.shape_cast %6 : vector<1x512x128xbf16> to vector<512x128xbf16>
    %cst = arith.constant dense<0.000000e+00> : vector<8x128xf32>
    %8 = tpu.matmul %5, %7, %cst {dimension_numbers = #tpu.dot_dimension_numbers<[1], [0], [0], [1], [0, 0, 1, 1], [], []>} : vector<8x512xbf16>, vector<512x128xbf16>, vector<8x128xf32> -> vector<8x128xf32>
    %9 = arith.addf %3, %8 : vector<8x128xf32>
    %c0_8 = arith.constant 0 : index
    %c0_9 = arith.constant 0 : index
    %10 = vector.load %arg8[%c0_8, %c0_9] : memref<8x128xf32, #tpu.memory_space<vmem>>, vector<8x128xf32>
    tpu.vector_store %arg8[%c0_8, %c0_9], %9 {strides = array<i32>} : memref<8x128xf32, #tpu.memory_space<vmem>>, vector<8x128xf32>,
    %c0_i32_10 = arith.constant 0 : i32
    %11 = arith.cmpi eq, %arg1, %c0_i32_10 : i32
    %12 = arith.extui %11 : i1 to i32
    %c0_i32_11 = arith.constant 0 : i32
    %13 = arith.cmpi ne, %12, %c0_i32_11 : i32
    scf.if %13 {
      %c0_12 = arith.constant 0 : index
      %c0_13 = arith.constant 0 : index
      %14 = vector.load %arg8[%c0_12, %c0_13] : memref<8x128xf32, #tpu.memory_space<vmem>>, vector<8x128xf32>
      %c0_14 = arith.constant 0 : index
      %c0_15 = arith.constant 0 : index
      %c0_16 = arith.constant 0 : index
      %15 = vector.load %arg4[%c0_14, %c0_15, %c0_16] : memref<1x1x128xf32, #tpu.memory_space<vmem>>, vector<1x1x128xf32>
      %16 = vector.shape_cast %15 : vector<1x1x128xf32> to vector<1x128xf32>
      %17 = vector.broadcast %16 : vector<1x128xf32> to vector<8x128xf32>
      %18 = arith.addf %14, %17 : vector<8x128xf32>
      %cst_17 = arith.constant 0.000000e+00 : f32
      %19 = vector.broadcast %cst_17 : f32 to vector<8x128xf32>
      %20 = arith.cmpf ogt, %18, %19 : vector<8x128xf32>
      %cst_18 = arith.constant 1.000000e-01 : f32
      %21 = vector.broadcast %cst_18 : f32 to vector<8x128xf32>
      %22 = arith.mulf %18, %21 : vector<8x128xf32>
      %23 = arith.select %20, %18, %22 : vector<8x128xi1>, vector<8x128xf32>
      %24 = arith.truncf %23 : vector<8x128xf32> to vector<8x128xbf16>
      %c0_19 = arith.constant 0 : index
      %c0_20 = arith.constant 0 : index
      %c0_21 = arith.constant 0 : index
      %25 = vector.load %arg5[%c0_19, %c0_20, %c0_21] : memref<1x128x128xbf16, #tpu.memory_space<vmem>>, vector<1x128x128xbf16>
      %26 = vector.shape_cast %25 : vector<1x128x128xbf16> to vector<128x128xbf16>
      %cst_22 = arith.constant dense<0.000000e+00> : vector<8x128xf32>
      %27 = tpu.matmul %24, %26, %cst_22 {dimension_numbers = #tpu.dot_dimension_numbers<[1], [0], [0], [1], [0, 0, 1, 1], [], []>} : vector<8x128xbf16>, vector<128x128xbf16>, vector<8x128xf32> -> vector<8x128xf32>
      %c0_23 = arith.constant 0 : index
      %c0_24 = arith.constant 0 : index
      %c0_25 = arith.constant 0 : index
      %28 = vector.load %arg6[%c0_23, %c0_24, %c0_25] : memref<1x1x128xf32, #tpu.memory_space<vmem>>, vector<1x1x128xf32>
      %29 = vector.shape_cast %28 : vector<1x1x128xf32> to vector<1x128xf32>
      %30 = vector.broadcast %29 : vector<1x128xf32> to vector<8x128xf32>
      %31 = arith.addf %27, %30 : vector<8x128xf32>
      %c0_26 = arith.constant 0 : index
      %c0_27 = arith.constant 0 : index
      %c0_28 = arith.constant 0 : index
      %32 = vector.load %arg7[%c0_26, %c0_27, %c0_28] : memref<1x8x128xf32, #tpu.memory_space<vmem>>, vector<1x8x128xf32>
      %33 = vector.shape_cast %32 : vector<1x8x128xf32> to vector<8x128xf32>
      %34 = vector.shape_cast %31 : vector<8x128xf32> to vector<1x8x128xf32>
      tpu.vector_store %arg7[%c0_26, %c0_27, %c0_28], %34 {strides = array<i32>} : memref<1x8x128xf32, #tpu.memory_space<vmem>>, vector<1x8x128xf32>,
    } else {
    }
    return
  }
  func.func @transform_0(%arg0: i32, %arg1: i32) -> (i32, i32, i32) {
    %c0_i32 = arith.constant 0 : i32
    %c0_i32_0 = arith.constant 0 : i32
    return %arg0, %c0_i32, %arg1 : i32, i32, i32
  }
  func.func @transform_1(%arg0: i32, %arg1: i32) -> (i32, i32, i32) {
    %c0_i32 = arith.constant 0 : i32
    %c0_i32_0 = arith.constant 0 : i32
    return %arg0, %arg1, %c0_i32 : i32, i32, i32
  }
  func.func @transform_2(%arg0: i32, %arg1: i32) -> (i32, i32, i32) {
    %c0_i32 = arith.constant 0 : i32
    %c0_i32_0 = arith.constant 0 : i32
    %c0_i32_1 = arith.constant 0 : i32
    return %arg0, %c0_i32, %c0_i32_0 : i32, i32, i32
  }
  func.func @transform_3(%arg0: i32, %arg1: i32) -> (i32, i32, i32) {
    %c0_i32 = arith.constant 0 : i32
    %c0_i32_0 = arith.constant 0 : i32
    %c0_i32_1 = arith.constant 0 : i32
    return %arg0, %c0_i32, %c0_i32_0 : i32, i32, i32
  }
  func.func @transform_4(%arg0: i32, %arg1: i32) -> (i32, i32, i32) {
    %c0_i32 = arith.constant 0 : i32
    %c0_i32_0 = arith.constant 0 : i32
    %c0_i32_1 = arith.constant 0 : i32
    return %arg0, %c0_i32, %c0_i32_0 : i32, i32, i32
  }
  func.func @transform_5(%arg0: i32, %arg1: i32) -> (i32, i32, i32) {
    %c0_i32 = arith.constant 0 : i32
    %c0_i32_0 = arith.constant 0 : i32
    %c0_i32_1 = arith.constant 0 : i32
    return %arg0, %c0_i32, %c0_i32_0 : i32, i32, i32
  }
}

</mosaic_0001>

<bundles_post_ra>
// kernel: deep_pco_forward.5
= control target key start
LH: loop header
LB: loop body
LE: loop exit
PB: predicated region body
PF: predicated region fallthrough
CT: control target
= control target key end

     0   :  { %s1650_s12 = smov 0   ;;  %s1652_s13 = smov 0   ;;  %s1782_s0 = inlined_call_operand.vmem [shape: bf16[2,256,128], index: 0, kind: input, shape index: {}]   ;;  %s1783_s1 = inlined_call_operand.vmem [shape: bf16[2,128,128], index: 1, kind: input, shape index: {}]   ;;  %s1784_s2 = inlined_call_operand.vmem [shape: f32[2,1,128], index: 2, kind: input, shape index: {}]   ;;  %s1785_s3 = inlined_call_operand.vmem [shape: bf16[2,256,128], index: 3, kind: output, shape index: {}]  }
   0x1   :  { %s1654_s14 = smov 0  }
   0x2 LB: > { %s39_s15 = sadd.s32 1, %s1624_s13  ;;  %p1274_p0 = scmp.ge.s32.totalorder %s1628_s14, 1  ;;  %s1628_s14 = sphi %s1654_s14, %s13_s14   ;;  %s1624_s13 = sphi %s1652_s13, %s1787_s13   ;;  %s1620_s12 = sphi %s1650_s12, %s1786_s12  }
   0x3   : > { %p41_p1 = scmp.ge.s32.totalorder %s39_s15, 2  ;;  %p214_p2 = scmp.lt.s32.totalorder %s1628_s14, 3 }
   0x5   : > { %s1789_s15 = smov (%p41_p1, %s39_s15), 0  ;;  %p215_p3 = pnand %p1274_p0, %p214_p2 }
   0x6   : > { %p271_p4 = scmp.lt.s32.totalorder (!%p215_p3), %s1620_s12, 1 }
   0x7   : > { %218 = sbr.rel (%p215_p3) target bundleno = 283 (0x11b), region = 32 }
   0xc   : > { %s1791_s12 = smov (!%p271_p4, %s1620_s12), 1 }
   0xd   : > { %s1341_s16 = sshll.u32 %s1791_s12, 6  ;;  %s1340_s20 = sshll.u32 %s1791_s12, 7 }
   0xe   : > { %s1674_s19 = scalar_lea.vmem %s1783_s1, %s1341_s16  ;;  %s1685_s23 = scalar_lea.vmem %s1782_s0, %s1340_s20 }
   0xf   : > { %v1582_v0 = vld [vmem:[%s1674_s19 + $0x38] sm:$0xff]   ;;  %v1583_v1 = vld [vmem:[%s1674_s19 + $0x30] sm:$0xff]   ;;  %v1584_v2 = vld [vmem:[%s1674_s19 + $0x28] sm:$0xff]   ;;  %s301_s26 = scalar_lea.vmem %s1784_s2, %s1791_s12  ;;  %s1727_s29 = scalar_lea.vmem %s1785_s3, %s1340_s20 }
  0x10   : > { %1494 = vmatprep.subr.bf16.mxu0 %v1582_v0  ;;  %1542 = vmatprep.subr.bf16.mxu1 %v1582_v0  ;;  %v1585_v3 = vld [vmem:[%s1674_s19 + $0x20] sm:$0xff]   ;;  %v1586_v6 = vld [vmem:[%s1674_s19 + $0x18] sm:$0xff]   ;;  %v1587_v7 = vld [vmem:[%s1674_s19 + $0x10] sm:$0xff]  }
  0x11   : > { %1495 = vmatpush3.bf16.msra.mxu0 %v1582_v0  ;;  %1550 = vmatpush3.bf16.msra.mxu1 %v1582_v0  ;;  %v1590_v4 = vld [vmem:[%s1685_s23] sm:$0xff]   ;;  %v1588_v8 = vld [vmem:[%s1674_s19 + $0x8] sm:$0xff]   ;;  %v1594_v12 = vld [vmem:[%s1685_s23 + $0x10] sm:$0xff]  }
  0x12   : > { %1496 = vmatprep.subr.bf16.mxu0 %v1583_v1  ;;  %1543 = vmatprep.subr.bf16.mxu1 %v1583_v1  ;;  %v1591_v5 = vld [vmem:[%s1685_s23 + $0x40] sm:$0xff]   ;;  %v1592_v10 = vld [vmem:[%s1685_s23 + $0x8] sm:$0xff]   ;;  %v1595_v13 = vld [vmem:[%s1685_s23 + $0x50] sm:$0xff]  }
  0x13   : > { %1510 = vmatprep.mubr.bf16.mxu0 %v1590_v4  ;;  %1526 = vmatprep.mubr.bf16.mxu1 %v1591_v5  ;;  %v1589_v9 = vld [vmem:[%s1674_s19] sm:$0xff]   ;;  %v1593_v11 = vld [vmem:[%s1685_s23 + $0x48] sm:$0xff]   ;;  %v1596_v14 = vld [vmem:[%s1685_s23 + $0x18] sm:$0xff]  }
  0x14   : > { %v1597_v15 = vld [vmem:[%s1685_s23 + $0x58] sm:$0xff]   ;;  %v1598_v16 = vld [vmem:[%s1685_s23 + $0x20] sm:$0xff]   ;;  %v1600_v18 = vld [vmem:[%s1685_s23 + $0x28] sm:$0xff]  }
  0x15   : > { %1497 = vmatpush3.bf16.msra.mxu0 %v1583_v1  ;;  %1551 = vmatpush3.bf16.msra.mxu1 %v1583_v1  ;;  %v1599_v17 = vld [vmem:[%s1685_s23 + $0x60] sm:$0xff]   ;;  %v1601_v19 = vld [vmem:[%s1685_s23 + $0x68] sm:$0xff]   ;;  %v1602_v20 = vld [vmem:[%s1685_s23 + $0x30] sm:$0xff]  }
  0x16   : > { %1498 = vmatprep.subr.bf16.mxu0 %v1584_v2  ;;  %1544 = vmatprep.subr.bf16.mxu1 %v1584_v2  ;;  %v1603_v21 = vld [vmem:[%s1685_s23 + $0x70] sm:$0xff]   ;;  %v1604_v22 = vld [vmem:[%s1685_s23 + $0x38] sm:$0xff]   ;;  %v1712_v24 = vld [vmem:[%s301_s26] ss:$0 sm:$0xff] }
  0x17   : > { %v1605_v23 = vld [vmem:[%s1685_s23 + $0x78] sm:$0xff]  }
  0x19   : > { %1499 = vmatpush3.bf16.msra.mxu0 %v1584_v2  ;;  %1552 = vmatpush3.bf16.msra.mxu1 %v1584_v2 }
  0x1a   : > { %1500 = vmatprep.subr.bf16.mxu0 %v1585_v3  ;;  %1545 = vmatprep.subr.bf16.mxu1 %v1585_v3 }
  0x1d   : > { %1501 = vmatpush3.bf16.msra.mxu0 %v1585_v3  ;;  %1553 = vmatpush3.bf16.msra.mxu1 %v1585_v3 }
  0x1e   : > { %1502 = vmatprep.subr.bf16.mxu0 %v1586_v6  ;;  %1546 = vmatprep.subr.bf16.mxu1 %v1586_v6 }
  0x21   : > { %1503 = vmatpush3.bf16.msra.mxu0 %v1586_v6  ;;  %1554 = vmatpush3.bf16.msra.mxu1 %v1586_v6 }
  0x22   : > { %1504 = vmatprep.subr.bf16.mxu0 %v1587_v7  ;;  %1547 = vmatprep.subr.bf16.mxu1 %v1587_v7 }
  0x25   : > { %1505 = vmatpush3.bf16.msra.mxu0 %v1587_v7  ;;  %1555 = vmatpush3.bf16.msra.mxu1 %v1587_v7 }
  0x26   : > { %1506 = vmatprep.subr.bf16.mxu0 %v1588_v8  ;;  %1548 = vmatprep.subr.bf16.mxu1 %v1588_v8 }
  0x29   : > { %1507 = vmatpush3.bf16.msra.mxu0 %v1588_v8  ;;  %1556 = vmatpush3.bf16.msra.mxu1 %v1588_v8 }
  0x2a   : > { %1508 = vmatprep.subr.bf16.mxu0 %v1589_v9  ;;  %1549 = vmatprep.subr.bf16.mxu1 %v1589_v9 }
  0x2d   : > { %1509 = vmatpush3.bf16.msra.mxu0 %v1589_v9  ;;  %1557 = vmatpush3.bf16.msra.mxu1 %v1589_v9 }
  0x30   : > { %1511 = vmatmul.mubr.bf16.vlgmr.msra.gmra.mxu0 %v1592_v10  ;;  %1527 = vmatmul.mubr.bf16.vlgmr.msra.gmra.mxu1 %v1593_v11 }
  0x31   : > { %1514 = vmatprep.mubr.bf16.mxu0 %v1594_v12  ;;  %1530 = vmatprep.mubr.bf16.mxu1 %v1595_v13 }
  0x38   : > { %1515 = vmatmul.mubr.bf16.gmra.mxu0 %v1596_v14  ;;  %1531 = vmatmul.mubr.bf16.gmra.mxu1 %v1597_v15 }
  0x39   : > { %1518 = vmatprep.mubr.bf16.mxu0 %v1598_v16  ;;  %1534 = vmatprep.mubr.bf16.mxu1 %v1599_v17 }
  0x40   : > { %1519 = vmatmul.mubr.bf16.gmra.mxu0 %v1600_v18  ;;  %1535 = vmatmul.mubr.bf16.gmra.mxu1 %v1601_v19 }
  0x41   : > { %1522 = vmatprep.mubr.bf16.mxu0 %v1602_v20  ;;  %1538 = vmatprep.mubr.bf16.mxu1 %v1603_v21 }
  0x48   : > { %1523 = vmatmul.mubr.bf16.gmra.mxu0 %v1604_v22  ;;  %1539 = vmatmul.mubr.bf16.gmra.mxu1 %v1605_v23 }
  0xf0   : > { %v1512_v25 = vpop.f32.mrf.mxu0  ;;  %v1528_v26 = vpop.f32.mrf.mxu1 }
  0xf1   : > { %v845_v27 = vadd.f32 %v1512_v25, %v1712_v24  ;;  %v861_v28 = vadd.f32 %v1528_v26, %v1712_v24 }
  0xf2   : > { %v610_v29 = vpop.f32.mrf.mxu0  ;;  %v674_v30 = vpop.f32.mrf.mxu1 }
  0xf3   : > { %vm877_vm0 = vcmp.gt.f32.partialorder %v845_v27, 0.0  ;;  %v909_v31 = vmul.f32 0.1, %v845_v27  ;;  %vm893_vm1 = vcmp.gt.f32.partialorder %v861_v28, 0.0  ;;  %v925_v32 = vmul.f32 0.1, %v861_v28 }
  0xf4   : > { %v843_v33 = vadd.f32 %v1712_v24, %v610_v29  ;;  %v859_v34 = vadd.f32 %v1712_v24, %v674_v30  ;;  %v1513_v35 = vpop.f32.mrf.mxu0  ;;  %v1529_v36 = vpop.f32.mrf.mxu1 }
  0xf5   : > { %v941_v37 = vsel %vm877_vm0, %v845_v27, %v909_v31  ;;  %v846_v38 = vadd.f32 %v1513_v35, %v1712_v24  ;;  %v862_v39 = vadd.f32 %v1529_v36, %v1712_v24  ;;  %v957_v40 = vsel %vm893_vm1, %v861_v28, %v925_v32 }
  0xf6   : > { %vm875_vm2 = vcmp.gt.f32.partialorder %v843_v33, 0.0  ;;  %v907_v41 = vmul.f32 0.1, %v843_v33  ;;  %vm891_vm3 = vcmp.gt.f32.partialorder %v859_v34, 0.0  ;;  %v613_v42 = vpop.f32.mrf.mxu0  ;;  %v677_v43 = vpop.f32.mrf.mxu1  ;;  %v923_v47 = vmul.f32 0.1, %v859_v34 }
  0xf7   : > { %vm878_vm4 = vcmp.gt.f32.partialorder %v846_v38, 0.0  ;;  %v910_v44 = vmul.f32 0.1, %v846_v38  ;;  %vm894_vm5 = vcmp.gt.f32.partialorder %v862_v39, 0.0  ;;  %v926_v45 = vmul.f32 0.1, %v862_v39 }
  0xf8   : > { %v939_v46 = vsel %vm875_vm2, %v843_v33, %v907_v41  ;;  %v844_v48 = vadd.f32 %v1712_v24, %v613_v42  ;;  %v860_v49 = vadd.f32 %v1712_v24, %v677_v43  ;;  %v1516_v50 = vpop.f32.mrf.mxu0  ;;  %v1532_v51 = vpop.f32.mrf.mxu1  ;;  %v955_v63 = vsel %vm891_vm3, %v859_v34, %v923_v47 }
  0xf9   : > { %v942_v52 = vsel %vm878_vm4, %v846_v38, %v910_v44  ;;  %v958_v53 = vsel %vm894_vm5, %v862_v39, %v926_v45  ;;  %v849_v54 = vadd.f32 %v1516_v50, %v1712_v24  ;;  %v865_v55 = vadd.f32 %v1532_v51, %v1712_v24 }
  0xfa   : > { %v1383_v56 = vpack.c.bf16 %v942_v52, %v941_v37  ;;  %v1423_v57 = vpack.c.bf16 %v958_v53, %v957_v40  ;;  %vm876_vm6 = vcmp.gt.f32.partialorder %v844_v48, 0.0  ;;  %v908_v58 = vmul.f32 0.1, %v844_v48  ;;  %v626_v59 = vpop.f32.mrf.mxu0  ;;  %v690_v60 = vpop.f32.mrf.mxu1 }
  0xfb   : > { %vm892_vm7 = vcmp.gt.f32.partialorder %v860_v49, 0.0  ;;  %v924_v61 = vmul.f32 0.1, %v860_v49  ;;  %vm881_vm8 = vcmp.gt.f32.partialorder %v849_v54, 0.0  ;;  %v913_v62 = vmul.f32 0.1, %v849_v54 }
  0xfc   : > { %1455 = vst [vmem:[%s1727_s29 + $0x8] sm:$0xff] %v1383_v56   ;;  %1463 = vst [vmem:[%s1727_s29 + $0x48] sm:$0xff] %v1423_v57   ;;  %v940_v0 = vsel %vm876_vm6, %v844_v48, %v908_v58  ;;  %v929_v1 = vmul.f32 0.1, %v865_v55  ;;  %v847_v2 = vadd.f32 %v1712_v24, %v626_v59  ;;  %v1517_v3 = vpop.f32.mrf.mxu0  ;;  %v1533_v4 = vpop.f32.mrf.mxu1  ;;  %vm897_vm9 = vcmp.gt.f32.partialorder %v865_v55, 0.0 }
  0xfd   : > { %v1378_v5 = vpack.c.bf16 %v940_v0, %v939_v46  ;;  %v956_v6 = vsel %vm892_vm7, %v860_v49, %v924_v61  ;;  %v863_v7 = vadd.f32 %v1712_v24, %v690_v60  ;;  %v945_v9 = vsel %vm881_vm8, %v849_v54, %v913_v62 }
  0xfe   : > { %v1418_v8 = vpack.c.bf16 %v956_v6, %v955_v63  ;;  %vm879_vm10 = vcmp.gt.f32.partialorder %v847_v2, 0.0  ;;  %v911_v10 = vmul.f32 0.1, %v847_v2  ;;  %v629_v11 = vpop.f32.mrf.mxu0  ;;  %v693_v12 = vpop.f32.mrf.mxu1  ;;  %v850_v14 = vadd.f32 %v1517_v3, %v1712_v24 }
  0xff   : > { %1379 = vst [vmem:[%s1727_s29] sm:$0xff] %v1378_v5   ;;  %vm895_vm11 = vcmp.gt.f32.partialorder %v863_v7, 0.0  ;;  %v927_v13 = vmul.f32 0.1, %v863_v7  ;;  %v866_v15 = vadd.f32 %v1533_v4, %v1712_v24  ;;  %v961_v16 = vsel %vm897_vm9, %v865_v55, %v929_v1 }
 0x100   : > { %1462 = vst [vmem:[%s1727_s29 + $0x40] sm:$0xff] %v1418_v8   ;;  %v943_v17 = vsel %vm879_vm10, %v847_v2, %v911_v10  ;;  %v848_v18 = vadd.f32 %v1712_v24, %v629_v11  ;;  %v864_v19 = vadd.f32 %v1712_v24, %v693_v12  ;;  %v1520_v20 = vpop.f32.mrf.mxu0  ;;  %v1536_v21 = vpop.f32.mrf.mxu1  ;;  %vm882_vm12 = vcmp.gt.f32.partialorder %v850_v14, 0.0 }
 0x101   : > { %v959_v22 = vsel %vm895_vm11, %v863_v7, %v927_v13  ;;  %v914_v23 = vmul.f32 0.1, %v850_v14  ;;  %vm898_vm13 = vcmp.gt.f32.partialorder %v866_v15, 0.0  ;;  %v930_v25 = vmul.f32 0.1, %v866_v15 }
 0x102   : > { %vm880_vm14 = vcmp.gt.f32.partialorder %v848_v18, 0.0  ;;  %v912_v26 = vmul.f32 0.1, %v848_v18  ;;  %vm896_vm15 = vcmp.gt.f32.partialorder %v864_v19, 0.0  ;;  %v642_v27 = vpop.f32.mrf.mxu0  ;;  %v706_v28 = vpop.f32.mrf.mxu1  ;;  %v928_v30 = vmul.f32 0.1, %v864_v19 }
 0x103   : > { %v946_v29 = vsel %vm882_vm12, %v850_v14, %v914_v23  ;;  %v853_v31 = vadd.f32 %v1520_v20, %v1712_v24  ;;  %v869_v32 = vadd.f32 %v1536_v21, %v1712_v24  ;;  %v962_v34 = vsel %vm898_vm13, %v866_v15, %v930_v25 }
 0x104   : > { %v1393_v33 = vpack.c.bf16 %v946_v29, %v945_v9  ;;  %v944_v35 = vsel %vm880_vm14, %v848_v18, %v912_v26  ;;  %v851_v36 = vadd.f32 %v1712_v24, %v642_v27  ;;  %v1521_v37 = vpop.f32.mrf.mxu0  ;;  %v1537_v38 = vpop.f32.mrf.mxu1  ;;  %v1433_v39 = vpack.c.bf16 %v962_v34, %v961_v16 }
 0x105   : > { %v1388_v40 = vpack.c.bf16 %v944_v35, %v943_v17  ;;  %v960_v41 = vsel %vm896_vm15, %v864_v19, %v928_v30  ;;  %vm885_vm0 = vcmp.gt.f32.partialorder %v853_v31, 0.0  ;;  %v917_v43 = vmul.f32 0.1, %v853_v31 }
 0x106   : > { %1457 = vst [vmem:[%s1727_s29 + $0x18] sm:$0xff] %v1393_v33   ;;  %v1428_v42 = vpack.c.bf16 %v960_v41, %v959_v22  ;;  %vm901_vm1 = vcmp.gt.f32.partialorder %v869_v32, 0.0  ;;  %v933_v44 = vmul.f32 0.1, %v869_v32  ;;  %v645_v45 = vpop.f32.mrf.mxu0  ;;  %v709_v46 = vpop.f32.mrf.mxu1  ;;  %1465 = vst [vmem:[%s1727_s29 + $0x58] sm:$0xff] %v1433_v39   ;;  %vm883_vm2 = vcmp.gt.f32.partialorder %v851_v36, 0.0 }
 0x107   : > { %1456 = vst [vmem:[%s1727_s29 + $0x10] sm:$0xff] %v1388_v40   ;;  %v915_v47 = vmul.f32 0.1, %v851_v36  ;;  %v867_v48 = vadd.f32 %v1712_v24, %v706_v28  ;;  %v854_v49 = vadd.f32 %v1521_v37, %v1712_v24  ;;  %v949_v50 = vsel %vm885_vm0, %v853_v31, %v917_v43 }
 0x108   : > { %1464 = vst [vmem:[%s1727_s29 + $0x50] sm:$0xff] %v1428_v42   ;;  %v870_v51 = vadd.f32 %v1537_v38, %v1712_v24  ;;  %v852_v52 = vadd.f32 %v1712_v24, %v645_v45  ;;  %v1524_v53 = vpop.f32.mrf.mxu0  ;;  %v1540_v54 = vpop.f32.mrf.mxu1  ;;  %v965_v55 = vsel %vm901_vm1, %v869_v32, %v933_v44  ;;  %v868_v63 = vadd.f32 %v1712_v24, %v709_v46 }
 0x109   : > { %v947_v56 = vsel %vm883_vm2, %v851_v36, %v915_v47  ;;  %vm899_vm3 = vcmp.gt.f32.partialorder %v867_v48, 0.0  ;;  %vm886_vm4 = vcmp.gt.f32.partialorder %v854_v49, 0.0  ;;  %v918_v57 = vmul.f32 0.1, %v854_v49 }
 0x10a   : > { %vm902_vm5 = vcmp.gt.f32.partialorder %v870_v51, 0.0  ;;  %v934_v58 = vmul.f32 0.1, %v870_v51  ;;  %vm884_vm6 = vcmp.gt.f32.partialorder %v852_v52, 0.0  ;;  %v658_v59 = vpop.f32.mrf.mxu0  ;;  %v722_v60 = vpop.f32.mrf.mxu1  ;;  %v931_v61 = vmul.f32 0.1, %v867_v48 }
 0x10b   : > { %v916_v62 = vmul.f32 0.1, %v852_v52  ;;  %v857_v0 = vadd.f32 %v1524_v53, %v1712_v24  ;;  %v950_v1 = vsel %vm886_vm4, %v854_v49, %v918_v57  ;;  %v873_v3 = vadd.f32 %v1540_v54, %v1712_v24 }
 0x10c   : > { %v966_v2 = vsel %vm902_vm5, %v870_v51, %v934_v58  ;;  %v855_v4 = vadd.f32 %v1712_v24, %v658_v59  ;;  %v1525_v5 = vpop.f32.mrf.mxu0  ;;  %v1541_v6 = vpop.f32.mrf.mxu1  ;;  %v1403_v7 = vpack.c.bf16 %v950_v1, %v949_v50  ;;  %vm900_vm7 = vcmp.gt.f32.partialorder %v868_v63, 0.0 }
 0x10d   : > { %v1443_v8 = vpack.c.bf16 %v966_v2, %v965_v55  ;;  %v948_v9 = vsel %vm884_vm6, %v852_v52, %v916_v62  ;;  %v932_v11 = vmul.f32 0.1, %v868_v63  ;;  %v921_v12 = vmul.f32 0.1, %v857_v0 }
 0x10e   : > { %v1398_v10 = vpack.c.bf16 %v948_v9, %v947_v56  ;;  %v963_v13 = vsel %vm899_vm3, %v867_v48, %v931_v61  ;;  %1459 = vst [vmem:[%s1727_s29 + $0x28] sm:$0xff] %v1403_v7   ;;  %vm889_vm8 = vcmp.gt.f32.partialorder %v857_v0, 0.0  ;;  %v937_v15 = vmul.f32 0.1, %v873_v3  ;;  %v661_v18 = vpop.f32.mrf.mxu0  ;;  %v725_v19 = vpop.f32.mrf.mxu1 }
 0x10f   : > { %1467 = vst [vmem:[%s1727_s29 + $0x68] sm:$0xff] %v1443_v8   ;;  %v964_v14 = vsel %vm900_vm7, %v868_v63, %v932_v11  ;;  %v871_v16 = vadd.f32 %v1712_v24, %v722_v60  ;;  %v858_v17 = vadd.f32 %v1525_v5, %v1712_v24  ;;  %vm905_vm9 = vcmp.gt.f32.partialorder %v873_v3, 0.0 }
 0x110   : > { %1458 = vst [vmem:[%s1727_s29 + $0x20] sm:$0xff] %v1398_v10   ;;  %v1438_v20 = vpack.c.bf16 %v964_v14, %v963_v13  ;;  %vm887_vm10 = vcmp.gt.f32.partialorder %v855_v4, 0.0  ;;  %v874_v21 = vadd.f32 %v1541_v6, %v1712_v24  ;;  %v953_v22 = vsel %vm889_vm8, %v857_v0, %v921_v12 }
 0x111   : > { %v919_v23 = vmul.f32 0.1, %v855_v4  ;;  %vm890_vm11 = vcmp.gt.f32.partialorder %v858_v17, 0.0  ;;  %v922_v25 = vmul.f32 0.1, %v858_v17  ;;  %v856_v27 = vadd.f32 %v1712_v24, %v661_v18 }
 0x112   : > { %1466 = vst [vmem:[%s1727_s29 + $0x60] sm:$0xff] %v1438_v20   ;;  %vm906_vm12 = vcmp.gt.f32.partialorder %v874_v21, 0.0  ;;  %v938_v26 = vmul.f32 0.1, %v874_v21  ;;  %v872_v28 = vadd.f32 %v1712_v24, %v725_v19  ;;  %v969_v29 = vsel %vm905_vm9, %v873_v3, %v937_v15 }
 0x113   : > { %vm903_vm13 = vcmp.gt.f32.partialorder %v871_v16, 0.0  ;;  %v935_v30 = vmul.f32 0.1, %v871_v16  ;;  %v954_v31 = vsel %vm890_vm11, %v858_v17, %v922_v25  ;;  %vm888_vm14 = vcmp.gt.f32.partialorder %v856_v27, 0.0 }
 0x114   : > { %v1413_v32 = vpack.c.bf16 %v954_v31, %v953_v22  ;;  %v970_v33 = vsel %vm906_vm12, %v874_v21, %v938_v26  ;;  %v920_v34 = vmul.f32 0.1, %v856_v27  ;;  %vm904_vm15 = vcmp.gt.f32.partialorder %v872_v28, 0.0 }
 0x115   : > { %v1453_v35 = vpack.c.bf16 %v970_v33, %v969_v29  ;;  %v936_v36 = vmul.f32 0.1, %v872_v28  ;;  %v951_v37 = vsel %vm887_vm10, %v855_v4, %v919_v23  ;;  %v967_v39 = vsel %vm903_vm13, %v871_v16, %v935_v30 }
 0x116   : > { %1461 = vst [vmem:[%s1727_s29 + $0x38] sm:$0xff] %v1413_v32   ;;  %v952_v38 = vsel %vm888_vm14, %v856_v27, %v920_v34 }
 0x117   : > { %1469 = vst [vmem:[%s1727_s29 + $0x78] sm:$0xff] %v1453_v35   ;;  %v1408_v24 = vpack.c.bf16 %v952_v38, %v951_v37  ;;  %v968_v40 = vsel %vm904_vm15, %v872_v28, %v936_v36 }
 0x118   : > { %v1448_v41 = vpack.c.bf16 %v968_v40, %v967_v39 }
 0x119   : > { %1460 = vst [vmem:[%s1727_s29 + $0x30] sm:$0xff] %v1408_v24  }
 0x11a   : > { %1468 = vst [vmem:[%s1727_s29 + $0x70] sm:$0xff] %v1448_v41  }
 0x11b PF: > { %s13_s14 = sadd.s32 1, %s1628_s14   ;;  %s1786_s12 = smov %s1624_s13 }
 0x11c   : > { %p10_p5 = scmp.ge.s32.totalorder %s13_s14, 4   ;;  %s1787_s13 = smov %s1789_s15 }
 0x11e   :  { %12 = sbr.rel (!%p10_p5) target bundleno = 2 (0x2), region = 76 }

// kernel: deep_pco_forward.6
= control target key start
LH: loop header
LB: loop body
LE: loop exit
PB: predicated region body
PF: predicated region fallthrough
CT: control target
= control target key end

     0   :  { %s1065_s12 = smov 0   ;;  %s1067_s13 = smov 0   ;;  %s1138_s0 = inlined_call_operand.vmem [shape: bf16[2,64,256], index: 0, kind: input, shape index: {}]   ;;  %s1139_s1 = inlined_call_operand.vmem [shape: bf16[2,256,128], index: 1, kind: input, shape index: {}]   ;;  %s1140_s2 = inlined_call_operand.vmem [shape: f32[2,1,128], index: 2, kind: input, shape index: {}]   ;;  %s1141_s3 = inlined_call_operand.vmem [shape: bf16[2,64,128], index: 3, kind: output, shape index: {}]  }
   0x1   :  { %s1069_s14 = smov 0  }
   0x2 LB: > { %s39_s15 = sadd.s32 1, %s1039_s13  ;;  %p837_p0 = scmp.ge.s32.totalorder %s1043_s14, 1  ;;  %s1043_s14 = sphi %s1069_s14, %s13_s14   ;;  %s1039_s13 = sphi %s1067_s13, %s1143_s13   ;;  %s1035_s12 = sphi %s1065_s12, %s1142_s12  }
   0x3   : > { %p41_p1 = scmp.ge.s32.totalorder %s39_s15, 2  ;;  %p217_p2 = scmp.lt.s32.totalorder %s1043_s14, 3 }
   0x5   : > { %s1145_s15 = smov (%p41_p1, %s39_s15), 0  ;;  %p218_p3 = pnand %p837_p0, %p217_p2 }
   0x6   : > { %p277_p4 = scmp.lt.s32.totalorder (!%p218_p3), %s1035_s12, 1 }
   0x7   : > { %221 = sbr.rel (%p218_p3) target bundleno = 265 (0x109), region = 32 }
   0xc   : > { %s1147_s12 = smov (!%p277_p4, %s1035_s12), 1 }
   0xd   : > { %s880_s16 = sshll.u32 %s1147_s12, 7  ;;  %s879_s20 = sshll.u32 %s1147_s12, 6 }
   0xe   : > { %s1089_s19 = scalar_lea.vmem %s1139_s1, %s880_s16  ;;  %s1104_s23 = scalar_lea.vmem %s1138_s0, %s879_s20 }
   0xf   : > { %v993_v0 = vld [vmem:[%s1089_s19 + $0x78] sm:$0xff]   ;;  %v995_v2 = vld [vmem:[%s1089_s19 + $0x70] sm:$0xff]   ;;  %v997_v4 = vld [vmem:[%s1089_s19 + $0x68] sm:$0xff]   ;;  %s309_s26 = scalar_lea.vmem %s1140_s2, %s1147_s12  ;;  %s881_s27 = sshll.u32 %s1147_s12, 5 }
  0x10   : > { %v994_v1 = vld [vmem:[%s1089_s19 + $0x38] sm:$0xff]   ;;  %913 = vmatprep.subr.bf16.mxu0 %v993_v0  ;;  %953 = vmatprep.subr.bf16.mxu1 %v993_v0  ;;  %v996_v3 = vld [vmem:[%s1089_s19 + $0x30] sm:$0xff]   ;;  %v998_v5 = vld [vmem:[%s1089_s19 + $0x28] sm:$0xff]   ;;  %s321_s30 = scalar_lea.vmem %s1141_s3, %s881_s27 }
  0x11   : > { %914 = vmatpush3.bf16.msra.mxu0 %v994_v1  ;;  %961 = vmatpush3.bf16.msra.mxu1 %v994_v1  ;;  %v999_v6 = vld [vmem:[%s1089_s19 + $0x60] sm:$0xff]   ;;  %v1001_v8 = vld [vmem:[%s1089_s19 + $0x58] sm:$0xff]   ;;  %v1003_v10 = vld [vmem:[%s1089_s19 + $0x50] sm:$0xff]  }
  0x12   : > { %915 = vmatprep.subr.bf16.mxu0 %v995_v2  ;;  %954 = vmatprep.subr.bf16.mxu1 %v995_v2  ;;  %v1000_v7 = vld [vmem:[%s1089_s19 + $0x20] sm:$0xff]   ;;  %v1002_v9 = vld [vmem:[%s1089_s19 + $0x18] sm:$0xff]   ;;  %v1004_v13 = vld [vmem:[%s1089_s19 + $0x10] sm:$0xff]  }
  0x13   : > { %v1011_v11 = vld [vmem:[%s1104_s23 + $0x4] ss:$8 sps:$4 sm:$0xff]   ;;  %v1009_v18 = vld [vmem:[%s1104_s23] ss:$8 sps:$4 sm:$0xff]   ;;  %v1015_v20 = vld [vmem:[%s1104_s23 + $0x14] ss:$8 sps:$4 sm:$0xff]  }
  0x14   : > { %v1014_v12 = vld [vmem:[%s1104_s23 + $0x24] ss:$8 sps:$4 sm:$0xff]   ;;  %552 = vmatprep.mubr.bf16.mxu0 %v1011_v11  ;;  %v1012_v19 = vld [vmem:[%s1104_s23 + $0x20] ss:$8 sps:$4 sm:$0xff]   ;;  %v1017_v21 = vld [vmem:[%s1104_s23 + $0x34] ss:$8 sps:$4 sm:$0xff]  }
  0x15   : > { %916 = vmatpush3.bf16.msra.mxu0 %v996_v3  ;;  %962 = vmatpush3.bf16.msra.mxu1 %v996_v3  ;;  %v1005_v14 = vld [vmem:[%s1089_s19 + $0x48] sm:$0xff]   ;;  %v1007_v16 = vld [vmem:[%s1089_s19 + $0x40] sm:$0xff]   ;;  %v1019_v22 = vld [vmem:[%s1104_s23 + $0x10] ss:$8 sps:$4 sm:$0xff]  }
  0x16   : > { %917 = vmatprep.subr.bf16.mxu0 %v997_v4  ;;  %955 = vmatprep.subr.bf16.mxu1 %v997_v4  ;;  %v1006_v15 = vld [vmem:[%s1089_s19 + $0x8] sm:$0xff]   ;;  %v1008_v17 = vld [vmem:[%s1089_s19] sm:$0xff]   ;;  %v1020_v23 = vld [vmem:[%s1104_s23 + $0x30] ss:$8 sps:$4 sm:$0xff]  }
  0x17   : > { %568 = vmatprep.mubr.bf16.mxu1 %v1014_v12  ;;  %v868_v27 = vld [vmem:[%s309_s26] ss:$0 sm:$0xff] }
  0x19   : > { %918 = vmatpush3.bf16.msra.mxu0 %v998_v5  ;;  %963 = vmatpush3.bf16.msra.mxu1 %v998_v5 }
  0x1a   : > { %919 = vmatprep.subr.bf16.mxu0 %v999_v6  ;;  %956 = vmatprep.subr.bf16.mxu1 %v999_v6 }
  0x1d   : > { %920 = vmatpush3.bf16.msra.mxu0 %v1000_v7  ;;  %964 = vmatpush3.bf16.msra.mxu1 %v1000_v7 }
  0x1e   : > { %921 = vmatprep.subr.bf16.mxu0 %v1001_v8  ;;  %957 = vmatprep.subr.bf16.mxu1 %v1001_v8 }
  0x21   : > { %922 = vmatpush3.bf16.msra.mxu0 %v1002_v9  ;;  %965 = vmatpush3.bf16.msra.mxu1 %v1002_v9 }
  0x22   : > { %923 = vmatprep.subr.bf16.mxu0 %v1003_v10  ;;  %958 = vmatprep.subr.bf16.mxu1 %v1003_v10 }
  0x25   : > { %924 = vmatpush3.bf16.msra.mxu0 %v1004_v13  ;;  %966 = vmatpush3.bf16.msra.mxu1 %v1004_v13 }
  0x26   : > { %925 = vmatprep.subr.bf16.mxu0 %v1005_v14  ;;  %959 = vmatprep.subr.bf16.mxu1 %v1005_v14 }
  0x29   : > { %926 = vmatpush3.bf16.msra.mxu0 %v1006_v15  ;;  %967 = vmatpush3.bf16.msra.mxu1 %v1006_v15 }
  0x2a   : > { %927 = vmatprep.subr.bf16.mxu0 %v1007_v16  ;;  %960 = vmatprep.subr.bf16.mxu1 %v1007_v16 }
  0x2d   : > { %928 = vmatpush3.bf16.msra.mxu0 %v1008_v17  ;;  %968 = vmatpush3.bf16.msra.mxu1 %v1008_v17 }
  0x30   : > { %553 = vmatmul.mubr.bf16.vlgmr.msra.gmra.mxu0 %v1009_v18  ;;  %569 = vmatmul.mubr.bf16.vlgmr.msra.gmra.mxu1 %v1012_v19 }
  0x31   : > { %560 = vmatprep.mubr.bf16.mxu0 %v1015_v20  ;;  %576 = vmatprep.mubr.bf16.mxu1 %v1017_v21 }
  0x38   : > { %561 = vmatmul.mubr.bf16.gmra.mxu0 %v1019_v22  ;;  %577 = vmatmul.mubr.bf16.gmra.mxu1 %v1020_v23 }
  0xf0   : > { %v929_v24 = vpop.f32.mrf.mxu0  ;;  %v941_v25 = vpop.f32.mrf.mxu1 }
  0xf2   : > { %v930_v26 = vpop.f32.mrf.mxu0  ;;  %v942_v28 = vpop.f32.mrf.mxu1 }
  0xf3   : > { %v931_v29 = vadd.f32 %v930_v26, %v929_v24  ;;  %v943_v30 = vadd.f32 %v942_v28, %v941_v25 }
  0xf4   : > { %v932_v31 = vpop.f32.mrf.mxu0  ;;  %v944_v32 = vpop.f32.mrf.mxu1 }
  0xf5   : > { %v619_v33 = vadd.f32 %v931_v29, %v868_v27  ;;  %v623_v34 = vadd.f32 %v943_v30, %v868_v27 }
  0xf6   : > { %v933_v35 = vpop.f32.mrf.mxu0  ;;  %v945_v36 = vpop.f32.mrf.mxu1 }
  0xf7   : > { %v934_v37 = vadd.f32 %v933_v35, %v932_v31  ;;  %v946_v38 = vadd.f32 %v945_v36, %v944_v32  ;;  %v635_v41 = vmul.f32 0.1, %v619_v33  ;;  %v639_v42 = vmul.f32 0.1, %v623_v34 }
  0xf8   : > { %v935_v39 = vpop.f32.mrf.mxu0  ;;  %v947_v40 = vpop.f32.mrf.mxu1  ;;  %vm627_vm0 = vcmp.gt.f32.partialorder %v619_v33, 0.0  ;;  %vm631_vm1 = vcmp.gt.f32.partialorder %v623_v34, 0.0 }
  0xf9   : > { %v620_v43 = vadd.f32 %v934_v37, %v868_v27  ;;  %v624_v44 = vadd.f32 %v946_v38, %v868_v27  ;;  %v643_v53 = vsel %vm627_vm0, %v619_v33, %v635_v41  ;;  %v647_v54 = vsel %vm631_vm1, %v623_v34, %v639_v42 }
  0xfa   : > { %v936_v45 = vpop.f32.mrf.mxu0  ;;  %v948_v46 = vpop.f32.mrf.mxu1 }
  0xfb   : > { %v937_v47 = vadd.f32 %v936_v45, %v935_v39  ;;  %v949_v48 = vadd.f32 %v948_v46, %v947_v40  ;;  %vm628_vm2 = vcmp.gt.f32.partialorder %v620_v43, 0.0  ;;  %v636_v49 = vmul.f32 0.1, %v620_v43 }
  0xfc   : > { %vm632_vm3 = vcmp.gt.f32.partialorder %v624_v44, 0.0  ;;  %v640_v50 = vmul.f32 0.1, %v624_v44  ;;  %v938_v51 = vpop.f32.mrf.mxu0  ;;  %v950_v52 = vpop.f32.mrf.mxu1 }
  0xfd   : > { %v644_v55 = vsel %vm628_vm2, %v620_v43, %v636_v49  ;;  %v621_v57 = vadd.f32 %v937_v47, %v868_v27  ;;  %v625_v58 = vadd.f32 %v949_v48, %v868_v27 }
  0xfe   : > { %v648_v56 = vsel %vm632_vm3, %v624_v44, %v640_v50  ;;  %v939_v59 = vpop.f32.mrf.mxu0  ;;  %v951_v60 = vpop.f32.mrf.mxu1  ;;  %v893_v61 = vpack.c.bf16 %v644_v55, %v643_v53 }
  0xff   : > { %v903_v62 = vpack.c.bf16 %v648_v56, %v647_v54  ;;  %v940_v63 = vadd.f32 %v939_v59, %v938_v51  ;;  %v952_v0 = vadd.f32 %v951_v60, %v950_v52  ;;  %v637_v1 = vmul.f32 0.1, %v621_v57 }
 0x100   : > { %894 = vst [vmem:[%s321_s30] sm:$0xff] %v893_v61   ;;  %v641_v2 = vmul.f32 0.1, %v625_v58  ;;  %vm629_vm4 = vcmp.gt.f32.partialorder %v621_v57, 0.0  ;;  %vm633_vm5 = vcmp.gt.f32.partialorder %v625_v58, 0.0 }
 0x101   : > { %911 = vst [vmem:[%s321_s30 + $0x10] sm:$0xff] %v903_v62   ;;  %v622_v3 = vadd.f32 %v940_v63, %v868_v27  ;;  %v626_v4 = vadd.f32 %v952_v0, %v868_v27  ;;  %v645_v7 = vsel %vm629_vm4, %v621_v57, %v637_v1 }
 0x102   : > { %v649_v8 = vsel %vm633_vm5, %v625_v58, %v641_v2 }
 0x103   : > { %vm630_vm6 = vcmp.gt.f32.partialorder %v622_v3, 0.0  ;;  %v638_v5 = vmul.f32 0.1, %v622_v3  ;;  %vm634_vm7 = vcmp.gt.f32.partialorder %v626_v4, 0.0  ;;  %v642_v6 = vmul.f32 0.1, %v626_v4 }
 0x105   : > { %v646_v9 = vsel %vm630_vm6, %v622_v3, %v638_v5  ;;  %v650_v10 = vsel %vm634_vm7, %v626_v4, %v642_v6 }
 0x106   : > { %v898_v11 = vpack.c.bf16 %v646_v9, %v645_v7  ;;  %v908_v12 = vpack.c.bf16 %v650_v10, %v649_v8 }
 0x108   : > { %910 = vst [vmem:[%s321_s30 + $0x8] sm:$0xff] %v898_v11   ;;  %912 = vst [vmem:[%s321_s30 + $0x18] sm:$0xff] %v908_v12  }
 0x109 PF: > { %s13_s14 = sadd.s32 1, %s1043_s14   ;;  %s1142_s12 = smov %s1039_s13 }
 0x10a   : > { %p10_p5 = scmp.ge.s32.totalorder %s13_s14, 4   ;;  %s1143_s13 = smov %s1145_s15 }
 0x10c   :  { %12 = sbr.rel (!%p10_p5) target bundleno = 2 (0x2), region = 76 }

// kernel: squeeze.15
= control target key start
LH: loop header
LB: loop body
LE: loop exit
PB: predicated region body
PF: predicated region fallthrough
CT: control target
= control target key end

     0   :  { %s19_s8 = smov 3  ;;  %vm21_vm0 = vcmask 523264   ;;  %s42_s9 = smov 64   ;;  %vm28_vm1 = vcmask 1048064   ;;  %v43_v6 = vmov 0.0   ;;  %s60_s0 = inlined_call_operand.vmem [shape: bf16[1,4,64], index: 0, kind: input, shape index: {}]   ;;  %s61_s1 = inlined_call_operand.vmem [shape: bf16[2,128], index: 1, kind: output, shape index: {}]  }
   0x1   :  { %v15_v0 = vld [vmem:[%s60_s0] sm:$0x3]  ;;  %s24_s0 = smov 3 }
   0x2   :  { %v16_v1 = vunpack.c.l.bf16 %v15_v0 }
   0x4   :  { %18 = vst [vmem:[#allocation1] sm:$0xf] %v16_v1 }
   0xb   :  { %v25_v2 = vld [vmem:[#allocation1 + $0x1] ss:$2 sm:%s24_s0]   ;;  %v20_v3 = vld [vmem:[#allocation1] ss:$2 sm:%s19_s8]  }
   0xc   :  { %26 = vrot.lane.b32.xlu0 %v25_v2, %s42_s9  ;;  %22 = vst.msk [vmem:[#allocation0] sm:$0x3] %vm21_vm0, %v20_v3  }
  0x7e   :  { %v27_v4 = vpop.permute.xlu0 %26  }
  0x7f   :  { %29 = vst.msk [vmem:[#allocation0] sm:$0x3] %vm28_vm1, %v27_v4  }
  0x86   :  { %v35_v5 = vld [vmem:[#allocation0] sm:$0x3] }
  0x87   :  { %v36_v7 = vpack.c.bf16 %v43_v6, %v35_v5 }
  0x89   :  { %39 = vst [vmem:[%s61_s1] sm:$0x1] %v36_v7 }

// kernel: deep_pco_forward.7
= control target key start
LH: loop header
LB: loop body
LE: loop exit
PB: predicated region body
PF: predicated region fallthrough
CT: control target
= control target key end

     0   :  { %s1004_s12 = smov 0   ;;  %s1006_s13 = smov 0   ;;  %s1075_s0 = inlined_call_operand.vmem [shape: bf16[2,16,384], index: 0, kind: input, shape index: {}]   ;;  %s1076_s1 = inlined_call_operand.vmem [shape: bf16[2,384,128], index: 1, kind: input, shape index: {}]   ;;  %s1077_s2 = inlined_call_operand.vmem [shape: f32[2,1,128], index: 2, kind: input, shape index: {}]   ;;  %s1078_s3 = inlined_call_operand.vmem [shape: bf16[2,16,128], index: 3, kind: output, shape index: {}]  }
   0x1   :  { %s1008_s14 = smov 0  }
   0x2 LB: > { %s39_s15 = sadd.s32 1, %s976_s13  ;;  %p806_p0 = scmp.ge.s32.totalorder %s980_s14, 1  ;;  %s980_s14 = sphi %s1008_s14, %s13_s14   ;;  %s976_s13 = sphi %s1006_s13, %s1080_s13   ;;  %s972_s12 = sphi %s1004_s12, %s1079_s12  }
   0x3   : > { %p41_p1 = scmp.ge.s32.totalorder %s39_s15, 2  ;;  %p217_p2 = scmp.lt.s32.totalorder %s980_s14, 3 }
   0x5   : > { %s1082_s15 = smov (%p41_p1, %s39_s15), 0  ;;  %p218_p3 = pnand %p806_p0, %p217_p2 }
   0x6   : > { %p277_p4 = scmp.lt.s32.totalorder (!%p218_p3), %s972_s12, 1 }
   0x7   : > { %221 = sbr.rel (%p218_p3) target bundleno = 261 (0x105), region = 32 }
   0xc   : > { %v982_v0 = vmov 0.0   ;;  %vm983_vm0 = vmmov 0   ;;  %s1084_s12 = smov (!%p277_p4, %s972_s12), 1 }
   0xd   : > { %882 = vmatprep.subr.bf16.mxu1 %v982_v0  ;;  %898 = vmatprep.mubr.msk.bf16.mxu1 %vm983_vm0, %v982_v0  ;;  %s903_s16 = smul.u32 192, %s1084_s12  ;;  %s309_s26 = scalar_lea.vmem %s1077_s2, %s1084_s12 }
   0xe   : > { %s902_s20 = smul.u32 24, %s1084_s12  ;;  %v838_v34 = vld [vmem:[%s309_s26] ss:$0 sm:$0xff]  ;;  %s843_s27 = sshll.u32 %s1084_s12, 3 }
   0xf   : > { %s1028_s19 = scalar_lea.vmem %s1076_s1, %s903_s16  ;;  %s321_s30 = scalar_lea.vmem %s1078_s3, %s843_s27 }
  0x10   : > { %v930_v1 = vld [vmem:[%s1028_s19 + $0x78] sm:$0xff]   ;;  %v933_v4 = vld [vmem:[%s1028_s19 + $0x70] sm:$0xff]   ;;  %v936_v7 = vld [vmem:[%s1028_s19 + $0x68] sm:$0xff]   ;;  %s288_s23 = scalar_lea.vmem %s1075_s0, %s902_s20 }
  0x11   : > { %v931_v2 = vld [vmem:[%s1028_s19 + $0xb8] sm:$0xff]   ;;  %851 = vmatprep.subr.bf16.mxu0 %v930_v1  ;;  %v934_v5 = vld [vmem:[%s1028_s19 + $0xb0] sm:$0xff]   ;;  %v937_v8 = vld [vmem:[%s1028_s19 + $0xa8] sm:$0xff]  }
  0x12   : > { %v932_v3 = vld [vmem:[%s1028_s19 + $0x38] sm:$0xff]   ;;  %883 = vmatpush3.bf16.msra.mxu1 %v931_v2  ;;  %v935_v6 = vld [vmem:[%s1028_s19 + $0x30] sm:$0xff]   ;;  %v938_v9 = vld [vmem:[%s1028_s19 + $0x28] sm:$0xff]  }
  0x13   : > { %852 = vmatpush3.bf16.msra.mxu0 %v932_v3  ;;  %884 = vmatprep.subr.bf16.mxu1 %v982_v0  ;;  %v939_v10 = vld [vmem:[%s1028_s19 + $0x60] sm:$0xff]   ;;  %v942_v13 = vld [vmem:[%s1028_s19 + $0x58] sm:$0xff]   ;;  %v945_v16 = vld [vmem:[%s1028_s19 + $0x50] sm:$0xff]  }
  0x14   : > { %853 = vmatprep.subr.bf16.mxu0 %v933_v4  ;;  %v940_v11 = vld [vmem:[%s1028_s19 + $0xa0] sm:$0xff]   ;;  %v943_v14 = vld [vmem:[%s1028_s19 + $0x98] sm:$0xff]   ;;  %v946_v17 = vld [vmem:[%s1028_s19 + $0x90] sm:$0xff]  }
  0x15   : > { %v941_v12 = vld [vmem:[%s1028_s19 + $0x20] sm:$0xff]   ;;  %v944_v15 = vld [vmem:[%s1028_s19 + $0x18] sm:$0xff]   ;;  %v947_v18 = vld [vmem:[%s1028_s19 + $0x10] sm:$0xff]  }
  0x16   : > { %885 = vmatpush3.bf16.msra.mxu1 %v934_v5  ;;  %v948_v19 = vld [vmem:[%s1028_s19 + $0x48] sm:$0xff]   ;;  %v951_v22 = vld [vmem:[%s1028_s19 + $0x40] sm:$0xff]  }
  0x17   : > { %854 = vmatpush3.bf16.msra.mxu0 %v935_v6  ;;  %886 = vmatprep.subr.bf16.mxu1 %v982_v0  ;;  %v949_v20 = vld [vmem:[%s1028_s19 + $0x88] sm:$0xff]   ;;  %v956_v23 = vld [vmem:[%s288_s23 + $0x4] ss:$12 sps:$4 sm:$0xff]  }
  0x18   : > { %855 = vmatprep.subr.bf16.mxu0 %v936_v7  ;;  %v950_v21 = vld [vmem:[%s1028_s19 + $0x8] sm:$0xff]   ;;  %v952_v24 = vld [vmem:[%s1028_s19 + $0x80] sm:$0xff]   ;;  %576 = vmatprep.mubr.bf16.mxu0 %v956_v23 }
  0x19   : > { %v953_v25 = vld [vmem:[%s1028_s19] sm:$0xff]   ;;  %v957_v26 = vld [vmem:[%s288_s23 + $0x8] ss:$12 sps:$4 sm:$0xff]  }
  0x1a   : > { %887 = vmatpush3.bf16.msra.mxu1 %v937_v8  ;;  %v954_v27 = vld [vmem:[%s288_s23] ss:$12 sps:$4 sm:$0xff]  }
  0x1b   : > { %856 = vmatpush3.bf16.msra.mxu0 %v938_v9  ;;  %888 = vmatprep.subr.bf16.mxu1 %v982_v0 }
  0x1c   : > { %857 = vmatprep.subr.bf16.mxu0 %v939_v10 }
  0x1e   : > { %889 = vmatpush3.bf16.msra.mxu1 %v940_v11 }
  0x1f   : > { %858 = vmatpush3.bf16.msra.mxu0 %v941_v12  ;;  %890 = vmatprep.subr.bf16.mxu1 %v982_v0 }
  0x20   : > { %859 = vmatprep.subr.bf16.mxu0 %v942_v13 }
  0x22   : > { %891 = vmatpush3.bf16.msra.mxu1 %v943_v14 }
  0x23   : > { %860 = vmatpush3.bf16.msra.mxu0 %v944_v15  ;;  %892 = vmatprep.subr.bf16.mxu1 %v982_v0 }
  0x24   : > { %861 = vmatprep.subr.bf16.mxu0 %v945_v16 }
  0x26   : > { %893 = vmatpush3.bf16.msra.mxu1 %v946_v17 }
  0x27   : > { %862 = vmatpush3.bf16.msra.mxu0 %v947_v18  ;;  %894 = vmatprep.subr.bf16.mxu1 %v982_v0 }
  0x28   : > { %863 = vmatprep.subr.bf16.mxu0 %v948_v19 }
  0x2a   : > { %895 = vmatpush3.bf16.msra.mxu1 %v949_v20 }
  0x2b   : > { %864 = vmatpush3.bf16.msra.mxu0 %v950_v21  ;;  %896 = vmatprep.subr.bf16.mxu1 %v982_v0 }
  0x2c   : > { %865 = vmatprep.subr.bf16.mxu0 %v951_v22 }
  0x2e   : > { %897 = vmatpush3.bf16.msra.mxu1 %v952_v24 }
  0x2f   : > { %866 = vmatpush3.bf16.msra.mxu0 %v953_v25 }
  0x31   : > { %899 = vmatmul.mubr.bf16.vlgmr.msra.gmra.mxu1 %v957_v26 }
  0x32   : > { %577 = vmatmul.mubr.bf16.vlgmr.msra.gmra.mxu0 %v954_v27 }
  0xf1   : > { %v619_v28 = vpop.f32.mrf.mxu1 }
  0xf2   : > { %v867_v29 = vpop.f32.mrf.mxu0 }
  0xf3   : > { %v900_v30 = vpop.f32.mrf.mxu1 }
  0xf4   : > { %v868_v31 = vpop.f32.mrf.mxu0 }
  0xf5   : > { %v869_v32 = vadd.f32 %v868_v31, %v867_v29  ;;  %v622_v33 = vpop.f32.mrf.mxu1 }
  0xf6   : > { %v870_v35 = vpop.f32.mrf.mxu0 }
  0xf7   : > { %v620_v36 = vadd.f32 %v869_v32, %v619_v28  ;;  %v901_v37 = vpop.f32.mrf.mxu1 }
  0xf8   : > { %v871_v38 = vpop.f32.mrf.mxu0 }
  0xf9   : > { %v642_v39 = vadd.f32 %v838_v34, %v620_v36  ;;  %v872_v40 = vadd.f32 %v871_v38, %v870_v35 }
  0xfb   : > { %v623_v41 = vadd.f32 %v872_v40, %v622_v33  ;;  %v646_v42 = vmul.f32 0.1, %v642_v39  ;;  %vm644_vm1 = vcmp.gt.f32.partialorder %v642_v39, 0.0 }
  0xfd   : > { %v643_v43 = vadd.f32 %v838_v34, %v623_v41  ;;  %v648_v45 = vsel %vm644_vm1, %v642_v39, %v646_v42 }
  0xff   : > { %vm645_vm2 = vcmp.gt.f32.partialorder %v643_v43, 0.0  ;;  %v647_v44 = vmul.f32 0.1, %v643_v43 }
 0x101   : > { %v649_v46 = vsel %vm645_vm2, %v643_v43, %v647_v44 }
 0x102   : > { %v849_v47 = vpack.c.bf16 %v649_v46, %v648_v45 }
 0x104   : > { %850 = vst [vmem:[%s321_s30] sm:$0xff] %v849_v47  }
 0x105 PF: > { %s13_s14 = sadd.s32 1, %s980_s14   ;;  %s1079_s12 = smov %s976_s13 }
 0x106   : > { %p10_p5 = scmp.ge.s32.totalorder %s13_s14, 4   ;;  %s1080_s13 = smov %s1082_s15 }
 0x108   :  { %12 = sbr.rel (!%p10_p5) target bundleno = 2 (0x2), region = 76 }

// kernel: deep_pco_forward.8
= control target key start
LH: loop header
LB: loop body
LE: loop exit
PB: predicated region body
PF: predicated region fallthrough
CT: control target
= control target key end

     0   :  { %v671_v36 = vmov 0.0   ;;  %vm672_vm0 = vmmov 0   ;;  %s828_s1 = inlined_call_operand.vmem [shape: bf16[1,640,128], index: 1, kind: input, shape index: {}]   ;;  %s829_s0 = inlined_call_operand.vmem [shape: bf16[1,8,640], index: 0, kind: input, shape index: {}]   ;;  %s830_s2 = inlined_call_operand.vmem [shape: f32[1,1,128], index: 2, kind: input, shape index: {}]   ;;  %s831_s3 = inlined_call_operand.vmem [shape: bf16[1,8,128], index: 3, kind: output, shape index: {}]  }
   0x1   :  { %v626_v0 = vld [vmem:[%s828_s1 + $0x78] sm:$0xff]   ;;  %v630_v4 = vld [vmem:[%s828_s1 + $0x70] sm:$0xff]   ;;  %v634_v8 = vld [vmem:[%s828_s1 + $0x68] sm:$0xff]  }
   0x2   :  { %v627_v1 = vld [vmem:[%s828_s1 + $0xf8] sm:$0xff]   ;;  %551 = vmatprep.subr.bf16.mxu0 %v626_v0  ;;  %v631_v5 = vld [vmem:[%s828_s1 + $0xf0] sm:$0xff]   ;;  %v635_v9 = vld [vmem:[%s828_s1 + $0xe8] sm:$0xff]  }
   0x3   :  { %v628_v2 = vld [vmem:[%s828_s1 + $0x38] sm:$0xff]   ;;  %573 = vmatprep.subr.bf16.mxu1 %v627_v1  ;;  %v632_v6 = vld [vmem:[%s828_s1 + $0x30] sm:$0xff]   ;;  %v636_v10 = vld [vmem:[%s828_s1 + $0x28] sm:$0xff]  }
   0x4   :  { %v629_v3 = vld [vmem:[%s828_s1 + $0xb8] sm:$0xff]   ;;  %552 = vmatpush3.bf16.msra.mxu0 %v628_v2  ;;  %v633_v7 = vld [vmem:[%s828_s1 + $0xb0] sm:$0xff]   ;;  %v637_v11 = vld [vmem:[%s828_s1 + $0xa8] sm:$0xff]  }
   0x5   :  { %574 = vmatpush3.bf16.msra.mxu1 %v629_v3  ;;  %553 = vmatprep.subr.bf16.mxu0 %v630_v4  ;;  %v638_v12 = vld [vmem:[%s828_s1 + $0x60] sm:$0xff]   ;;  %v642_v16 = vld [vmem:[%s828_s1 + $0x58] sm:$0xff]   ;;  %v646_v20 = vld [vmem:[%s828_s1 + $0x50] sm:$0xff]  }
   0x6   :  { %575 = vmatprep.subr.bf16.mxu1 %v631_v5  ;;  %v639_v13 = vld [vmem:[%s828_s1 + $0xe0] sm:$0xff]   ;;  %v643_v17 = vld [vmem:[%s828_s1 + $0xd8] sm:$0xff]   ;;  %v647_v21 = vld [vmem:[%s828_s1 + $0xd0] sm:$0xff]  }
   0x7   :  { %v640_v14 = vld [vmem:[%s828_s1 + $0x20] sm:$0xff]   ;;  %v644_v18 = vld [vmem:[%s828_s1 + $0x18] sm:$0xff]   ;;  %v648_v22 = vld [vmem:[%s828_s1 + $0x10] sm:$0xff]  }
   0x8   :  { %554 = vmatpush3.bf16.msra.mxu0 %v632_v6  ;;  %v641_v15 = vld [vmem:[%s828_s1 + $0xa0] sm:$0xff]   ;;  %v645_v19 = vld [vmem:[%s828_s1 + $0x98] sm:$0xff]   ;;  %v649_v23 = vld [vmem:[%s828_s1 + $0x90] sm:$0xff]  }
   0x9   :  { %576 = vmatpush3.bf16.msra.mxu1 %v633_v7  ;;  %555 = vmatprep.subr.bf16.mxu0 %v634_v8  ;;  %v650_v24 = vld [vmem:[%s828_s1 + $0x48] sm:$0xff]   ;;  %v654_v28 = vld [vmem:[%s828_s1 + $0x40] sm:$0xff]   ;;  %v663_v39 = vld [vmem:[%s828_s1 + $0x138] sm:$0xff]  }
   0xa   :  { %577 = vmatprep.subr.bf16.mxu1 %v635_v9  ;;  %v651_v25 = vld [vmem:[%s828_s1 + $0xc8] sm:$0xff]   ;;  %v655_v29 = vld [vmem:[%s828_s1 + $0xc0] sm:$0xff]   ;;  %v664_v40 = vld [vmem:[%s828_s1 + $0x130] sm:$0xff]  }
   0xb   :  { %v652_v26 = vld [vmem:[%s828_s1 + $0x8] sm:$0xff]   ;;  %v656_v30 = vld [vmem:[%s828_s1] sm:$0xff]   ;;  %v667_v43 = vld [vmem:[%s828_s1 + $0x118] sm:$0xff]  }
   0xc   :  { %556 = vmatpush3.bf16.msra.mxu0 %v636_v10  ;;  %v653_v27 = vld [vmem:[%s828_s1 + $0x88] sm:$0xff]   ;;  %v657_v31 = vld [vmem:[%s828_s1 + $0x80] sm:$0xff]   ;;  %v668_v44 = vld [vmem:[%s828_s1 + $0x110] sm:$0xff]  }
   0xd   :  { %578 = vmatpush3.bf16.msra.mxu1 %v637_v11  ;;  %557 = vmatprep.subr.bf16.mxu0 %v638_v12  ;;  %v21_v32 = vld [vmem:[%s829_s0] sm:$0xff]  ;;  %v22_v35 = vld [vmem:[%s829_s0 + $0x8] sm:$0xff]  ;;  %v660_v47 = vld [vmem:[%s829_s0 + $0x10] ss:$0 sps:$4 sm:$0xff]  }
   0xe   :  { %579 = vmatprep.subr.bf16.mxu1 %v639_v13  ;;  %v505_v33 = vcombine.low %v21_v32, %v21_v32  ;;  %v506_v34 = vcombine.high %v21_v32, %v21_v32  ;;  %v507_v37 = vcombine.low %v22_v35, %v22_v35  ;;  %v508_v38 = vcombine.high %v22_v35, %v22_v35  ;;  %v665_v41 = vld [vmem:[%s828_s1 + $0x128] sm:$0xff]   ;;  %v666_v42 = vld [vmem:[%s828_s1 + $0x120] sm:$0xff]  }
   0xf   :  { %v669_v45 = vld [vmem:[%s828_s1 + $0x108] sm:$0xff]   ;;  %v670_v46 = vld [vmem:[%s828_s1 + $0x100] sm:$0xff]  }
  0x10   :  { %558 = vmatpush3.bf16.msra.mxu0 %v640_v14  ;;  %394 = vmatprep.mubr.bf16.mxu0 %v506_v34  ;;  %v550_v60 = vld [vmem:[%s830_s2] ss:$0 sm:$0xff] }
  0x11   :  { %580 = vmatpush3.bf16.msra.mxu1 %v641_v15  ;;  %559 = vmatprep.subr.bf16.mxu0 %v642_v16 }
  0x12   :  { %581 = vmatprep.subr.bf16.mxu1 %v643_v17  ;;  %434 = vmatprep.mubr.bf16.mxu1 %v508_v38 }
  0x14   :  { %560 = vmatpush3.bf16.msra.mxu0 %v644_v18 }
  0x15   :  { %582 = vmatpush3.bf16.msra.mxu1 %v645_v19  ;;  %561 = vmatprep.subr.bf16.mxu0 %v646_v20 }
  0x16   :  { %583 = vmatprep.subr.bf16.mxu1 %v647_v21 }
  0x18   :  { %562 = vmatpush3.bf16.msra.mxu0 %v648_v22 }
  0x19   :  { %584 = vmatpush3.bf16.msra.mxu1 %v649_v23  ;;  %563 = vmatprep.subr.bf16.mxu0 %v650_v24 }
  0x1a   :  { %585 = vmatprep.subr.bf16.mxu1 %v651_v25 }
  0x1c   :  { %564 = vmatpush3.bf16.msra.mxu0 %v652_v26 }
  0x1d   :  { %586 = vmatpush3.bf16.msra.mxu1 %v653_v27  ;;  %565 = vmatprep.subr.bf16.mxu0 %v654_v28 }
  0x1e   :  { %587 = vmatprep.subr.bf16.mxu1 %v655_v29 }
  0x20   :  { %566 = vmatpush3.bf16.msra.mxu0 %v656_v30 }
  0x21   :  { %588 = vmatpush3.bf16.msra.mxu1 %v657_v31  ;;  %604 = vmatprep.subr.bf16.mxu0 %v671_v36 }
  0x23   :  { %395 = vmatmul.mubr.bf16.vlgmr.msra.gmra.mxu0 %v505_v33 }
  0x24   :  { %435 = vmatmul.mubr.bf16.vlgmr.msra.gmra.mxu1 %v507_v37  ;;  %605 = vmatpush3.bf16.msra.mxu0 %v663_v39 }
  0x25   :  { %606 = vmatprep.subr.bf16.mxu0 %v671_v36  ;;  %620 = vmatprep.mubr.msk.bf16.mxu0 %vm672_vm0, %v671_v36 }
  0x28   :  { %607 = vmatpush3.bf16.msra.mxu0 %v664_v40 }
  0x29   :  { %608 = vmatprep.subr.bf16.mxu0 %v671_v36 }
  0x2c   :  { %609 = vmatpush3.bf16.msra.mxu0 %v665_v41 }
  0x2d   :  { %610 = vmatprep.subr.bf16.mxu0 %v671_v36 }
  0x30   :  { %611 = vmatpush3.bf16.msra.mxu0 %v666_v42 }
  0x31   :  { %612 = vmatprep.subr.bf16.mxu0 %v671_v36 }
  0x34   :  { %613 = vmatpush3.bf16.msra.mxu0 %v667_v43 }
  0x35   :  { %614 = vmatprep.subr.bf16.mxu0 %v671_v36 }
  0x38   :  { %615 = vmatpush3.bf16.msra.mxu0 %v668_v44 }
  0x39   :  { %616 = vmatprep.subr.bf16.mxu0 %v671_v36 }
  0x3c   :  { %617 = vmatpush3.bf16.msra.mxu0 %v669_v45 }
  0x3d   :  { %618 = vmatprep.subr.bf16.mxu0 %v671_v36 }
  0x40   :  { %619 = vmatpush3.bf16.msra.mxu0 %v670_v46 }
  0x43   :  { %621 = vmatmul.mubr.bf16.vlgmr.msra.gmra.mxu0 %v660_v47 }
  0xe3   :  { %v567_v48 = vpop.f32.mrf.mxu0 }
  0xe4   :  { %v589_v49 = vpop.f32.mrf.mxu1 }
  0xe5   :  { %v568_v50 = vpop.f32.mrf.mxu0 }
  0xe6   :  { %v590_v51 = vpop.f32.mrf.mxu1  ;;  %v569_v56 = vadd.f32 %v568_v50, %v567_v48 }
  0xe7   :  { %v570_v52 = vpop.f32.mrf.mxu0  ;;  %v591_v57 = vadd.f32 %v590_v51, %v589_v49 }
  0xe8   :  { %v592_v53 = vpop.f32.mrf.mxu1 }
  0xe9   :  { %v571_v54 = vpop.f32.mrf.mxu0  ;;  %v437_v58 = vadd.f32 %v591_v57, %v569_v56 }
  0xea   :  { %v593_v55 = vpop.f32.mrf.mxu1 }
 0x103   :  { %v476_v59 = vpop.f32.mrf.mxu0 }
 0x104   :  { %v477_v61 = vadd.f32 %v476_v59, %v437_v58 }
 0x105   :  { %v622_v62 = vpop.f32.mrf.mxu0 }
 0x106   :  { %v495_v63 = vadd.f32 %v550_v60, %v477_v61 }
 0x107   :  { %v479_v0 = vpop.f32.mrf.mxu0 }
 0x108   :  { %vm496_vm1 = vcmp.gt.f32.partialorder %v495_v63, 0.0  ;;  %v497_v1 = vmul.f32 0.1, %v495_v63 }
 0x109   :  { %v623_v2 = vpop.f32.mrf.mxu0 }
 0x10a   :  { %v498_v3 = vsel %vm496_vm1, %v495_v63, %v497_v1 }
 0x10b   :  { %v499_v4 = vpack.c.bf16 %v498_v3, %v498_v3 }
 0x10d   :  { %500 = vst [vmem:[%s831_s3] sm:$0xf] %v499_v4 }

// kernel: deep_pco_forward.9
= control target key start
LH: loop header
LB: loop body
LE: loop exit
PB: predicated region body
PF: predicated region fallthrough
CT: control target
= control target key end

     0   :  { %s1201_s18 = smov 0   ;;  %s1203_s19 = smov 0   ;;  %s1298_s0 = inlined_call_operand.vmem [shape: bf16[2,8,512], index: 0, kind: input, shape index: {}]   ;;  %s1299_s1 = inlined_call_operand.vmem [shape: bf16[2,512,128], index: 1, kind: input, shape index: {}]   ;;  %s1300_s2 = inlined_call_operand.vmem [shape: f32[2,1,128], index: 2, kind: input, shape index: {}]   ;;  %s1301_s3 = inlined_call_operand.vmem [shape: bf16[2,128,128], index: 3, kind: input, shape index: {}]   ;;  %s1302_s4 = inlined_call_operand.vmem [shape: f32[2,1,128], index: 4, kind: input, shape index: {}]   ;;  %s1303_s5 = inlined_call_operand.vmem [shape: f32[2,8,128], index: 5, kind: output, shape index: {}]  }
   0x1   :  { %s1205_s20 = smov 0  }
   0x2 LB: > { %s27_s21 = sadd.s32 1, %s1163_s19  ;;  %p943_p0 = scmp.ge.s32.totalorder %s1167_s20, 1  ;;  %s1167_s20 = sphi %s1205_s20, %s15_s20   ;;  %s1163_s19 = sphi %s1203_s19, %s1305_s19   ;;  %s1159_s18 = sphi %s1201_s18, %s1304_s18  }
   0x3   : > { %p29_p1 = scmp.ge.s32.totalorder %s27_s21, 2  ;;  %p249_p2 = scmp.lt.s32.totalorder %s1167_s20, 3 }
   0x5   : > { %s1307_s21 = smov (%p29_p1, %s27_s21), 0  ;;  %p250_p3 = pnand %p943_p0, %p249_p2 }
   0x6   : > { %p301_p4 = scmp.lt.s32.totalorder (!%p250_p3), %s1159_s18, 1 }
   0x7   : > { %253 = sbr.rel (%p250_p3) target bundleno = 455 (0x1c7), region = 40 }
   0xc   : > { %s1309_s18 = smov (!%p301_p4, %s1159_s18), 1  ;;  %v1169_v39 = vmov 0.0   ;;  %vm1170_vm0 = vmmov 0  }
   0xd   : > { %s1000_s22 = sshll.u32 %s1309_s18, 8  ;;  %s999_s26 = sshll.u32 %s1309_s18, 4 }
   0xe   : > { %s1225_s25 = scalar_lea.vmem %s1299_s1, %s1000_s22  ;;  %s1001_s27 = sshll.u32 %s1309_s18, 6 }
   0xf   : > { %v1101_v0 = vld [vmem:[%s1225_s25 + $0x78] sm:$0xff]   ;;  %v1105_v4 = vld [vmem:[%s1225_s25 + $0x70] sm:$0xff]   ;;  %v1109_v8 = vld [vmem:[%s1225_s25 + $0x68] sm:$0xff]   ;;  %s308_s30 = scalar_lea.vmem %s1298_s0, %s999_s26  ;;  %s1266_s8 = scalar_lea.vmem %s1301_s3, %s1001_s27 }
  0x10   : > { %v1102_v1 = vld [vmem:[%s1225_s25 + $0xf8] sm:$0xff]   ;;  %1002 = vmatprep.subr.bf16.mxu0 %v1101_v0  ;;  %v1106_v5 = vld [vmem:[%s1225_s25 + $0xf0] sm:$0xff]   ;;  %v1110_v9 = vld [vmem:[%s1225_s25 + $0xe8] sm:$0xff]   ;;  %s322_s11 = scalar_lea.vmem %s1300_s2, %s1309_s18  ;;  %s330_s14 = scalar_lea.vmem %s1302_s4, %s1309_s18 }
  0x11   : > { %v1103_v2 = vld [vmem:[%s1225_s25 + $0x38] sm:$0xff]   ;;  %1024 = vmatprep.subr.bf16.mxu1 %v1102_v1  ;;  %v1107_v6 = vld [vmem:[%s1225_s25 + $0x30] sm:$0xff]   ;;  %v1111_v10 = vld [vmem:[%s1225_s25 + $0x28] sm:$0xff]   ;;  %s950_s15 = sshll.u32 %s1309_s18, 3 }
  0x12   : > { %v1104_v3 = vld [vmem:[%s1225_s25 + $0xb8] sm:$0xff]   ;;  %1003 = vmatpush3.bf16.msra.mxu0 %v1103_v2  ;;  %v1108_v7 = vld [vmem:[%s1225_s25 + $0xb0] sm:$0xff]   ;;  %v1112_v11 = vld [vmem:[%s1225_s25 + $0xa8] sm:$0xff]   ;;  %s334_s22 = scalar_lea.vmem %s1303_s5, %s950_s15 }
  0x13   : > { %1025 = vmatpush3.bf16.msra.mxu1 %v1104_v3  ;;  %1004 = vmatprep.subr.bf16.mxu0 %v1105_v4  ;;  %v1113_v12 = vld [vmem:[%s1225_s25 + $0x60] sm:$0xff]   ;;  %v1117_v16 = vld [vmem:[%s1225_s25 + $0x58] sm:$0xff]   ;;  %v1121_v20 = vld [vmem:[%s1225_s25 + $0x50] sm:$0xff]  }
  0x14   : > { %1026 = vmatprep.subr.bf16.mxu1 %v1106_v5  ;;  %v1114_v13 = vld [vmem:[%s1225_s25 + $0xe0] sm:$0xff]   ;;  %v1118_v17 = vld [vmem:[%s1225_s25 + $0xd8] sm:$0xff]   ;;  %v1122_v21 = vld [vmem:[%s1225_s25 + $0xd0] sm:$0xff]  }
  0x15   : > { %v1115_v14 = vld [vmem:[%s1225_s25 + $0x20] sm:$0xff]   ;;  %v1119_v18 = vld [vmem:[%s1225_s25 + $0x18] sm:$0xff]   ;;  %v1123_v22 = vld [vmem:[%s1225_s25 + $0x10] sm:$0xff]  }
  0x16   : > { %1005 = vmatpush3.bf16.msra.mxu0 %v1107_v6  ;;  %v1116_v15 = vld [vmem:[%s1225_s25 + $0xa0] sm:$0xff]   ;;  %v1120_v19 = vld [vmem:[%s1225_s25 + $0x98] sm:$0xff]   ;;  %v1124_v23 = vld [vmem:[%s1225_s25 + $0x90] sm:$0xff]  }
  0x17   : > { %1027 = vmatpush3.bf16.msra.mxu1 %v1108_v7  ;;  %1006 = vmatprep.subr.bf16.mxu0 %v1109_v8  ;;  %v1125_v24 = vld [vmem:[%s1225_s25 + $0x48] sm:$0xff]   ;;  %v1129_v28 = vld [vmem:[%s1225_s25 + $0x40] sm:$0xff]   ;;  %v1137_v38 = vld [vmem:[%s1266_s8 + $0x38] sm:$0xff]  }
  0x18   : > { %1028 = vmatprep.subr.bf16.mxu1 %v1110_v9  ;;  %v1126_v25 = vld [vmem:[%s1225_s25 + $0xc8] sm:$0xff]   ;;  %v1130_v29 = vld [vmem:[%s1225_s25 + $0xc0] sm:$0xff]   ;;  %v1138_v40 = vld [vmem:[%s1266_s8 + $0x30] sm:$0xff]  }
  0x19   : > { %v1127_v26 = vld [vmem:[%s1225_s25 + $0x8] sm:$0xff]   ;;  %v1131_v30 = vld [vmem:[%s1225_s25] sm:$0xff]   ;;  %v1141_v43 = vld [vmem:[%s1266_s8 + $0x18] sm:$0xff]  }
  0x1a   : > { %1007 = vmatpush3.bf16.msra.mxu0 %v1111_v10  ;;  %v1128_v27 = vld [vmem:[%s1225_s25 + $0x88] sm:$0xff]   ;;  %v1132_v31 = vld [vmem:[%s1225_s25 + $0x80] sm:$0xff]   ;;  %v1142_v44 = vld [vmem:[%s1266_s8 + $0x10] sm:$0xff]  }
  0x1b   : > { %1029 = vmatpush3.bf16.msra.mxu1 %v1112_v11  ;;  %1008 = vmatprep.subr.bf16.mxu0 %v1113_v12  ;;  %v342_v32 = vld [vmem:[%s308_s30] sm:$0xff]  ;;  %v343_v33 = vld [vmem:[%s308_s30 + $0x8] sm:$0xff] }
  0x1c   : > { %1030 = vmatprep.subr.bf16.mxu1 %v1114_v13  ;;  %v951_v34 = vcombine.low %v342_v32, %v342_v32  ;;  %v952_v35 = vcombine.high %v342_v32, %v342_v32  ;;  %v953_v36 = vcombine.low %v343_v33, %v343_v33  ;;  %v954_v37 = vcombine.high %v343_v33, %v343_v33  ;;  %v1139_v41 = vld [vmem:[%s1266_s8 + $0x28] sm:$0xff]   ;;  %v1140_v42 = vld [vmem:[%s1266_s8 + $0x20] sm:$0xff]  }
  0x1d   : > { %v1143_v45 = vld [vmem:[%s1266_s8 + $0x8] sm:$0xff]   ;;  %v1144_v46 = vld [vmem:[%s1266_s8] sm:$0xff]  }
  0x1e   : > { %1009 = vmatpush3.bf16.msra.mxu0 %v1115_v14  ;;  %646 = vmatprep.mubr.bf16.mxu0 %v952_v35  ;;  %v987_v53 = vld [vmem:[%s322_s11] ss:$0 sm:$0xff] }
  0x1f   : > { %1031 = vmatpush3.bf16.msra.mxu1 %v1116_v15  ;;  %1010 = vmatprep.subr.bf16.mxu0 %v1117_v16  ;;  %v988_v63 = vld [vmem:[%s330_s14] ss:$0 sm:$0xff] }
  0x20   : > { %1032 = vmatprep.subr.bf16.mxu1 %v1118_v17  ;;  %686 = vmatprep.mubr.bf16.mxu1 %v954_v37 }
  0x22   : > { %1011 = vmatpush3.bf16.msra.mxu0 %v1119_v18 }
  0x23   : > { %1033 = vmatpush3.bf16.msra.mxu1 %v1120_v19  ;;  %1012 = vmatprep.subr.bf16.mxu0 %v1121_v20 }
  0x24   : > { %1034 = vmatprep.subr.bf16.mxu1 %v1122_v21 }
  0x26   : > { %1013 = vmatpush3.bf16.msra.mxu0 %v1123_v22 }
  0x27   : > { %1035 = vmatpush3.bf16.msra.mxu1 %v1124_v23  ;;  %1014 = vmatprep.subr.bf16.mxu0 %v1125_v24 }
  0x28   : > { %1036 = vmatprep.subr.bf16.mxu1 %v1126_v25 }
  0x2a   : > { %1015 = vmatpush3.bf16.msra.mxu0 %v1127_v26 }
  0x2b   : > { %1037 = vmatpush3.bf16.msra.mxu1 %v1128_v27  ;;  %1016 = vmatprep.subr.bf16.mxu0 %v1129_v28 }
  0x2c   : > { %1038 = vmatprep.subr.bf16.mxu1 %v1130_v29 }
  0x2e   : > { %1017 = vmatpush3.bf16.msra.mxu0 %v1131_v30 }
  0x2f   : > { %1039 = vmatpush3.bf16.msra.mxu1 %v1132_v31  ;;  %1055 = vmatprep.subr.bf16.mxu0 %v1169_v39 }
  0x31   : > { %647 = vmatmul.mubr.bf16.vlgmr.msra.gmra.mxu0 %v951_v34 }
  0x32   : > { %687 = vmatmul.mubr.bf16.vlgmr.msra.gmra.mxu1 %v953_v36  ;;  %1056 = vmatpush3.bf16.msra.mxu0 %v1137_v38 }
  0x33   : > { %1057 = vmatprep.subr.bf16.mxu0 %v1169_v39  ;;  %1071 = vmatprep.mubr.msk.bf16.mxu0 %vm1170_vm0, %v1169_v39 }
  0x36   : > { %1058 = vmatpush3.bf16.msra.mxu0 %v1138_v40 }
  0x37   : > { %1059 = vmatprep.subr.bf16.mxu0 %v1169_v39 }
  0x3a   : > { %1060 = vmatpush3.bf16.msra.mxu0 %v1139_v41 }
  0x3b   : > { %1061 = vmatprep.subr.bf16.mxu0 %v1169_v39 }
  0x3e   : > { %1062 = vmatpush3.bf16.msra.mxu0 %v1140_v42 }
  0x3f   : > { %1063 = vmatprep.subr.bf16.mxu0 %v1169_v39 }
  0x42   : > { %1064 = vmatpush3.bf16.msra.mxu0 %v1141_v43 }
  0x43   : > { %1065 = vmatprep.subr.bf16.mxu0 %v1169_v39 }
  0x46   : > { %1066 = vmatpush3.bf16.msra.mxu0 %v1142_v44 }
  0x47   : > { %1067 = vmatprep.subr.bf16.mxu0 %v1169_v39 }
  0x4a   : > { %1068 = vmatpush3.bf16.msra.mxu0 %v1143_v45 }
  0x4b   : > { %1069 = vmatprep.subr.bf16.mxu0 %v1169_v39 }
  0x4e   : > { %1070 = vmatpush3.bf16.msra.mxu0 %v1144_v46 }
  0xf1   : > { %v1018_v47 = vpop.f32.mrf.mxu0 }
  0xf2   : > { %v1040_v48 = vpop.f32.mrf.mxu1 }
  0xf3   : > { %v1019_v49 = vpop.f32.mrf.mxu0 }
  0xf4   : > { %v1041_v50 = vpop.f32.mrf.mxu1  ;;  %v1020_v51 = vadd.f32 %v1019_v49, %v1018_v47 }
  0xf5   : > { %v1042_v52 = vadd.f32 %v1041_v50, %v1040_v48  ;;  %v1021_v54 = vpop.f32.mrf.mxu0 }
  0xf6   : > { %v1043_v55 = vpop.f32.mrf.mxu1 }
  0xf7   : > { %v689_v56 = vadd.f32 %v1042_v52, %v1020_v51  ;;  %v1022_v57 = vpop.f32.mrf.mxu0 }
  0xf8   : > { %v1044_v58 = vpop.f32.mrf.mxu1 }
  0xf9   : > { %v707_v59 = vadd.f32 %v987_v53, %v689_v56 }
  0xfb   : > { %vm708_vm1 = vcmp.gt.f32.partialorder %v707_v59, 0.0  ;;  %v709_v60 = vmul.f32 0.1, %v707_v59 }
  0xfd   : > { %v710_v61 = vsel %vm708_vm1, %v707_v59, %v709_v60 }
  0xfe   : > { %v711_v62 = vpack.c.bf16 %v710_v61, %v710_v61 }
 0x100   : > { %1072 = vmatmul.mubr.bf16.vlgmr.msra.gmra.mxu0 %v711_v62 }
 0x1c0   : > { %v817_v0 = vpop.f32.mrf.mxu0 }
 0x1c1   : > { %v818_v1 = vadd.f32 %v988_v63, %v817_v0 }
 0x1c2   : > { %v1073_v2 = vpop.f32.mrf.mxu0 }
 0x1c3   : > { %823 = vst [vmem:[%s334_s22] sm:$0xff] %v818_v1 }
 0x1c4   : > { %v820_v3 = vpop.f32.mrf.mxu0 }
 0x1c6   : > { %v1074_v4 = vpop.f32.mrf.mxu0 }
 0x1c7 PF: > { %s15_s20 = sadd.s32 1, %s1167_s20   ;;  %s1304_s18 = smov %s1163_s19 }
 0x1c8   : > { %p12_p5 = scmp.ge.s32.totalorder %s15_s20, 4   ;;  %s1305_s19 = smov %s1307_s21 }
 0x1ca   :  { %14 = sbr.rel (!%p12_p5) target bundleno = 2 (0x2), region = 90 }

</bundles_post_ra>
